<compile_context>
chip_gen: v5e
topology: v5e:2x2
jax: 0.10.0
libtpu: 0.0.40
codegen_flags: <defaults>
</compile_context>

<pallas_src>
import math
import numpy as np

import jax
import jax.numpy as jnp
from jax.experimental import pallas as pl
from jax.experimental.pallas import tpu as pltpu

# ---- small config consistent with the module's __init__ ----
B = 2          # batch
C = 4          # n_clusters
S = 8          # seq_len
D = 32         # latent_ndim
H = 2          # nheads
DH = D // H    # head dim
L = 2          # nlayers
BS = B * S
LN_EPS = 1e-5
P_LANES = 3 * D    # 96: lane width of the packed parameter slab


# ---------------------------------------------------------------------------
# Packed-parameter layout (shared by host packer and kernel; all offsets static)
# ---------------------------------------------------------------------------
def _seg_list():
    segs = [
        ("E",     (BS, B)),        # batch-expansion matrix
        ("ffw1",  (BS, 1)),        # ff = MLP(1, S), tiled over batch, (S,C) orientation
        ("ffb1",  (BS, 1)),
        ("ffw2",  (BS, BS)),       # block-diagonal second ff layer
        ("ffb2",  (BS, 1)),
        ("embw1", (C, D)),         # emb = MLP(C, D) + LayerNorm((S, D))
        ("embb1", (1, D)),
        ("embw2", (D, D)),
        ("embb2", (1, D)),
        ("embg",  (S, D)),
        ("embbt", (S, D)),
        ("cos",   (BS, D)),        # rotary tables, tiled over batch
        ("sin",   (BS, D)),
        ("rotR",  (D, D)),         # rotate_half as signed pair-swap permutation
    ]
    for l in range(L):
        segs += [
            (f"ln1g{l}", (1, D)), (f"ln1b{l}", (1, D)),
            (f"wqkv{l}", (D, 3 * D)), (f"bqkv{l}", (1, 3 * D)),
            (f"wo{l}",   (D, D)), (f"bo{l}",   (1, D)),
            (f"ln2g{l}", (1, D)), (f"ln2b{l}", (1, D)),
            (f"fw1{l}",  (D, D)), (f"fb1{l}",  (1, D)),
            (f"fw2{l}",  (D, D)), (f"fb2{l}",  (1, D)),
        ]
    segs += [
        ("hw1",  (D, 2 * D)),      # concat(mu_w1, lv_w1)
        ("hb1",  (1, 2 * D)),
        ("hw2",  (2 * D, 2 * D)),  # blockdiag(mu_w2, lv_w2)
        ("hb2",  (1, 2 * D)),
        ("mug",  (S, D)), ("mubt", (S, D)),
        ("lvg",  (S, D)), ("lvbt", (S, D)),
    ]
    return segs


def _build_layout():
    layout = {}
    row = 0
    for name, shape in _seg_list():
        layout[name] = (row, shape)
        row += ((shape[0] + 7) // 8) * 8     # keep every segment sublane(8)-aligned
    return layout, row


_LAYOUT, _PROWS = _build_layout()


# ---------------------------------------------------------------------------
# Kernel helpers
# ---------------------------------------------------------------------------
def _silu(x):
    return x * jax.nn.sigmoid(x)


def _ln_rows(x, g, b):
    # LayerNorm over the last (feature) dim, rows = B*S
    m = jnp.mean(x, axis=-1, keepdims=True)
    v = jnp.mean((x - m) ** 2, axis=-1, keepdims=True)
    return (x - m) * jax.lax.rsqrt(v + LN_EPS) * g + b


def _ln_seq_feat(x2, g, b):
    # nn.LayerNorm((S, D)): normalize jointly over (S, D) per batch element.
    # x2: (B*S, D) folded slab -> returns (B, S, D)
    x3 = x2.reshape(B, S, D)
    m = jnp.mean(jnp.mean(x3, axis=2, keepdims=True), axis=1, keepdims=True)
    d = x3 - m
    v = jnp.mean(jnp.mean(d * d, axis=2, keepdims=True), axis=1, keepdims=True)
    return d * jax.lax.rsqrt(v + LN_EPS) * g + b


# ---------------------------------------------------------------------------
# Kernel
# ---------------------------------------------------------------------------
def pz_y_kernel(y_ref, ep_ref, p_ref, out_ref):
    def P(name):                               # static slice into the packed parameter slab
        row, (r, c) = _LAYOUT[name]
        return p_ref[row:row + r, 0:c]

    y = y_ref[...]                             # (B, C)

    # ---- self.ff = MLP(1, seq_len) on y.view(B, C, 1), then permute(0,2,1) ----
    # computed directly in the folded (B*S, C) orientation.
    yx = jnp.dot(P("E"), y, preferred_element_type=jnp.float32)                       # (BS, C)
    a = _silu(P("ffw1") * yx + P("ffb1"))                                              # (BS, C)
    x = jnp.dot(P("ffw2"), a, preferred_element_type=jnp.float32) + P("ffb2")          # (BS, C)

    # ---- self.emb = MLP(n_clusters, latent_ndim) + LayerNorm((S, D)) ----
    x = _silu(jnp.dot(x, P("embw1"), preferred_element_type=jnp.float32) + P("embb1"))  # (BS, D)
    x = jnp.dot(x, P("embw2"), preferred_element_type=jnp.float32) + P("embb2")
    x = _ln_seq_feat(x, P("embg"), P("embbt")).reshape(BS, D)

    # ---- rotary positional embedding (offset=1, interleaved pairs) ----
    x = x * P("cos") + jnp.dot(x, P("rotR"),
                               preferred_element_type=jnp.float32) * P("sin")

    # ---- transformer encoder blocks (attn weights are discarded, matching forward) ----
    scale = 1.0 / math.sqrt(DH)
    for l in range(L):
        xn = _ln_rows(x, P(f"ln1g{l}"), P(f"ln1b{l}"))
        qkv = jnp.dot(xn, P(f"wqkv{l}"), preferred_element_type=jnp.float32) + P(f"bqkv{l}")
        qkv3 = qkv.reshape(B, S, 3 * D)                                                 # (B, S, 3D)
        heads = []
        for h in range(H):
            qh = qkv3[..., h * DH:(h + 1) * DH]                                         # (B, S, DH)
            kh = qkv3[..., D + h * DH:D + (h + 1) * DH]
            vh = qkv3[..., 2 * D + h * DH:2 * D + (h + 1) * DH]
            s = jnp.einsum('bqd,bkd->bqk', qh, kh,
                           preferred_element_type=jnp.float32) * scale                 # (B, S, S)
            s = s - jnp.max(s, axis=-1, keepdims=True)
            aw = jnp.exp(s)
            aw = aw * pl.reciprocal(jnp.sum(aw, axis=-1, keepdims=True), approx=True)
            heads.append(jnp.einsum('bqk,bkd->bqd', aw, vh,
                                    preferred_element_type=jnp.float32))                # (B, S, DH)
        attn = jnp.concatenate(heads, axis=-1).reshape(BS, D)
        x = x + jnp.dot(attn, P(f"wo{l}"), preferred_element_type=jnp.float32) + P(f"bo{l}")
        xn = _ln_rows(x, P(f"ln2g{l}"), P(f"ln2b{l}"))
        ffh = _silu(jnp.dot(xn, P(f"fw1{l}"), preferred_element_type=jnp.float32) + P(f"fb1{l}"))
        x = x + jnp.dot(ffh, P(f"fw2{l}"), preferred_element_type=jnp.float32) + P(f"fb2{l}")

    # ---- fused ff_mu / ff_logvar heads: MLP(D,D) + LayerNorm((S,D)) each ----
    hcat = _silu(jnp.dot(x, P("hw1"), preferred_element_type=jnp.float32) + P("hb1"))   # (BS, 2D)
    hcat = jnp.dot(hcat, P("hw2"), preferred_element_type=jnp.float32) + P("hb2")       # (BS, 2D)
    mu = _ln_seq_feat(hcat[:, 0:D], P("mug"), P("mubt"))                                # (B, S, D)
    lv = _ln_seq_feat(hcat[:, D:2 * D], P("lvg"), P("lvbt"))                            # (B, S, D)

    # ---- reparameterization: z = mu + exp(logvar/2) * eps ----
    z = mu + jnp.exp(lv * 0.5) * ep_ref[...]

    out_ref[0, ...] = z
    out_ref[1, ...] = mu
    out_ref[2, ...] = lv


# ---------------------------------------------------------------------------
# Host-side parameter construction & packing
# ---------------------------------------------------------------------------
def _pack_params(p):
    slab = np.zeros((_PROWS, P_LANES), np.float32)
    for name, (row, shape) in _LAYOUT.items():
        v = np.asarray(p[name], np.float32)
        assert v.shape == tuple(shape), (name, v.shape, shape)
        slab[row:row + shape[0], :shape[1]] = v
    return jnp.asarray(slab)


def init_params(key):
    ks = iter(jax.random.split(key, 64))

    def w(shape, fan_in):
        return np.asarray(jax.random.normal(next(ks), shape, jnp.float32)) / math.sqrt(fan_in)

    def bvec(shape):
        return np.asarray(jax.random.normal(next(ks), shape, jnp.float32)) * 0.02

    p = {}

    # batch-expansion matrix E: row b*S+s selects y[b]
    E = np.zeros((BS, B), np.float32)
    for b in range(B):
        E[b * S:(b + 1) * S, b] = 1.0
    p["E"] = E

    # self.ff = MLP(1, S): Linear(1,S) -> SiLU -> Linear(S,S), evaluated in (S, C) orientation;
    # tiled over batch, second layer block-diagonal over the folded batch axis.
    ffw1 = w((S, 1), 1)
    ffb1 = bvec((S, 1))
    ffw2 = w((S, S), S)
    ffb2 = bvec((S, 1))
    p["ffw1"] = np.tile(ffw1, (B, 1))
    p["ffb1"] = np.tile(ffb1, (B, 1))
    p["ffb2"] = np.tile(ffb2, (B, 1))
    ffw2bd = np.zeros((BS, BS), np.float32)
    for b in range(B):
        ffw2bd[b * S:(b + 1) * S, b * S:(b + 1) * S] = ffw2
    p["ffw2"] = ffw2bd

    # self.emb = MLP(C, D) + LayerNorm((S, D))
    p["embw1"] = w((C, D), C); p["embb1"] = bvec((1, D))
    p["embw2"] = w((D, D), D); p["embb2"] = bvec((1, D))
    p["embg"] = np.ones((S, D), np.float32)
    p["embbt"] = np.zeros((S, D), np.float32)

    # rotary tables (theta=10000, interleaved pairs, positions offset by 1), tiled over batch
    pos = np.arange(1, S + 1, dtype=np.float32)
    inv_freq = 1.0 / (10000.0 ** (np.arange(0, D, 2, dtype=np.float32) / D))
    freqs = np.repeat(pos[:, None] * inv_freq[None, :], 2, axis=-1)        # (S, D)
    p["cos"] = np.tile(np.cos(freqs), (B, 1))
    p["sin"] = np.tile(np.sin(freqs), (B, 1))
    R = np.zeros((D, D), np.float32)                                       # rotate_half
    for i in range(D // 2):
        R[2 * i + 1, 2 * i] = -1.0
        R[2 * i, 2 * i + 1] = 1.0
    p["rotR"] = R

    # transformer encoder blocks
    for l in range(L):
        p[f"ln1g{l}"] = np.ones((1, D), np.float32)
        p[f"ln1b{l}"] = np.zeros((1, D), np.float32)
        p[f"wqkv{l}"] = w((D, 3 * D), D); p[f"bqkv{l}"] = bvec((1, 3 * D))
        p[f"wo{l}"] = w((D, D), D);       p[f"bo{l}"] = bvec((1, D))
        p[f"ln2g{l}"] = np.ones((1, D), np.float32)
        p[f"ln2b{l}"] = np.zeros((1, D), np.float32)
        p[f"fw1{l}"] = w((D, D), D);      p[f"fb1{l}"] = bvec((1, D))
        p[f"fw2{l}"] = w((D, D), D);      p[f"fb2{l}"] = bvec((1, D))

    # fused ff_mu / ff_logvar heads
    mu_w1, mu_b1 = w((D, D), D), bvec((1, D))
    mu_w2, mu_b2 = w((D, D), D), bvec((1, D))
    lv_w1, lv_b1 = w((D, D), D), bvec((1, D))
    lv_w2, lv_b2 = w((D, D), D), bvec((1, D))
    p["hw1"] = np.concatenate([mu_w1, lv_w1], axis=1)
    p["hb1"] = np.concatenate([mu_b1, lv_b1], axis=1)
    hw2 = np.zeros((2 * D, 2 * D), np.float32)
    hw2[:D, :D] = mu_w2
    hw2[D:, D:] = lv_w2
    p["hw2"] = hw2
    p["hb2"] = np.concatenate([mu_b2, lv_b2], axis=1)
    p["mug"] = np.ones((S, D), np.float32); p["mubt"] = np.zeros((S, D), np.float32)
    p["lvg"] = np.ones((S, D), np.float32); p["lvbt"] = np.zeros((S, D), np.float32)

    return _pack_params(p)


# ---------------------------------------------------------------------------
# Wrapper
# ---------------------------------------------------------------------------
def pz_y_forward(y, ep, pslab):
    out = pl.pallas_call(
        pz_y_kernel,
        out_shape=jax.ShapeDtypeStruct((3, B, S, D), jnp.float32),
        grid_spec=pltpu.PrefetchScalarGridSpec(
            num_scalar_prefetch=0,
            grid=(1,),
            in_specs=[
                pl.BlockSpec((B, C), lambda i: (0, 0)),
                pl.BlockSpec((B, S, D), lambda i: (0, 0, 0)),
                pl.BlockSpec((_PROWS, P_LANES), lambda i: (0, 0)),
            ],
            out_specs=pl.BlockSpec((3, B, S, D), lambda i: (0, 0, 0, 0)),
        ),
        compiler_params=pltpu.CompilerParams(
            dimension_semantics=("arbitrary",)),
    )(y, ep, pslab)
    return out[0], out[1], out[2]


if __name__ == "__main__":
    key = jax.random.PRNGKey(0)
    kp, ky, ke = jax.random.split(key, 3)
    pslab = init_params(kp)
    y = jax.random.normal(ky, (B, C), jnp.float32)                 # module input (B, n_clusters)
    # torch.randn_like(logvar_prior) -> epsilon drawn in the wrapper, consumed in-kernel
    ep = jax.random.normal(ke, (B, S, D), jnp.float32)

    z_prior, mu_prior, logvar_prior = pz_y_forward(y, ep, pslab)
    jax.block_until_ready((z_prior, mu_prior, logvar_prior))

    assert z_prior.shape == (B, S, D)
    assert mu_prior.shape == (B, S, D)
    assert logvar_prior.shape == (B, S, D)
    assert jnp.all(jnp.isfinite(z_prior)) and jnp.all(jnp.isfinite(mu_prior)) \
        and jnp.all(jnp.isfinite(logvar_prior))
    print("KERNEL_OK")
</pallas_src>

<mosaic_0001>
module attributes {stable_mosaic.version = 11 : i64} {
  func.func @pz_y_kernel(%arg0: i32, %arg1: memref<2x4xf32, #tpu.memory_space<vmem>>, %arg2: memref<2x8x32xf32, #tpu.memory_space<vmem>>, %arg3: memref<744x96xf32, #tpu.memory_space<vmem>>, %arg4: memref<3x2x8x32xf32, #tpu.memory_space<vmem>>) attributes {dimension_semantics = [#tpu.dimension_semantics<arbitrary>], iteration_bounds = array<i64: 1>, scalar_prefetch = 0 : i64, scratch_operands = 0 : i64, tpu.core_type = #tpu.core_type<tc>, window_params = [{pipeline_mode = #tpu.pipeline_mode<synchronous>, transform_indices = @transform_0, window_bounds = array<i64: 2, 4>}, {pipeline_mode = #tpu.pipeline_mode<synchronous>, transform_indices = @transform_1, window_bounds = array<i64: 2, 8, 32>}, {pipeline_mode = #tpu.pipeline_mode<synchronous>, transform_indices = @transform_2, window_bounds = array<i64: 744, 96>}, {pipeline_mode = #tpu.pipeline_mode<synchronous>, transform_indices = @transform_3, window_bounds = array<i64: 3, 2, 8, 32>}]} {
    %c0 = arith.constant 0 : index
    %c0_0 = arith.constant 0 : index
    %0 = vector.load %arg1[%c0, %c0_0] : memref<2x4xf32, #tpu.memory_space<vmem>>, vector<2x4xf32>
    %c0_1 = arith.constant 0 : index
    %c0_2 = arith.constant 0 : index
    %1 = vector.load %arg3[%c0_1, %c0_2] : memref<744x96xf32, #tpu.memory_space<vmem>>, vector<16x2xf32>
    %cst = arith.constant dense<0.000000e+00> : vector<16x4xf32>
    %2 = tpu.matmul %1, %0, %cst {dimension_numbers = #tpu.dot_dimension_numbers<[1], [0], [0], [1], [0, 0, 1, 1], [], []>} : vector<16x2xf32>, vector<2x4xf32>, vector<16x4xf32> -> vector<16x4xf32>
    %c16 = arith.constant 16 : index
    %c0_3 = arith.constant 0 : index
    %3 = vector.load %arg3[%c16, %c0_3] : memref<744x96xf32, #tpu.memory_space<vmem>>, vector<16x1xf32>
    %4 = vector.broadcast %3 : vector<16x1xf32> to vector<16x4xf32>
    %5 = arith.mulf %4, %2 : vector<16x4xf32>
    %c32 = arith.constant 32 : index
    %c0_4 = arith.constant 0 : index
    %6 = vector.load %arg3[%c32, %c0_4] : memref<744x96xf32, #tpu.memory_space<vmem>>, vector<16x1xf32>
    %7 = vector.broadcast %6 : vector<16x1xf32> to vector<16x4xf32>
    %8 = arith.addf %5, %7 : vector<16x4xf32>
    %9 = arith.negf %8 : vector<16x4xf32>
    %10 = math.exp %9 : vector<16x4xf32>
    %cst_5 = arith.constant 1.000000e+00 : f32
    %11 = vector.broadcast %cst_5 : f32 to vector<16x4xf32>
    %12 = arith.addf %11, %10 : vector<16x4xf32>
    %13 = arith.divf %11, %12 : vector<16x4xf32>
    %14 = arith.mulf %8, %13 : vector<16x4xf32>
    %c48 = arith.constant 48 : index
    %c0_6 = arith.constant 0 : index
    %15 = vector.load %arg3[%c48, %c0_6] : memref<744x96xf32, #tpu.memory_space<vmem>>, vector<16x16xf32>
    %cst_7 = arith.constant dense<0.000000e+00> : vector<16x4xf32>
    %16 = tpu.matmul %15, %14, %cst_7 {dimension_numbers = #tpu.dot_dimension_numbers<[1], [0], [0], [1], [0, 0, 1, 1], [], []>} : vector<16x16xf32>, vector<16x4xf32>, vector<16x4xf32> -> vector<16x4xf32>
    %c64 = arith.constant 64 : index
    %c0_8 = arith.constant 0 : index
    %17 = vector.load %arg3[%c64, %c0_8] : memref<744x96xf32, #tpu.memory_space<vmem>>, vector<16x1xf32>
    %18 = vector.broadcast %17 : vector<16x1xf32> to vector<16x4xf32>
    %19 = arith.addf %16, %18 : vector<16x4xf32>
    %c80 = arith.constant 80 : index
    %c0_9 = arith.constant 0 : index
    %20 = vector.load %arg3[%c80, %c0_9] : memref<744x96xf32, #tpu.memory_space<vmem>>, vector<4x32xf32>
    %cst_10 = arith.constant dense<0.000000e+00> : vector<16x32xf32>
    %21 = tpu.matmul %19, %20, %cst_10 {dimension_numbers = #tpu.dot_dimension_numbers<[1], [0], [0], [1], [0, 0, 1, 1], [], []>} : vector<16x4xf32>, vector<4x32xf32>, vector<16x32xf32> -> vector<16x32xf32>
    %c88 = arith.constant 88 : index
    %c0_11 = arith.constant 0 : index
    %22 = vector.load %arg3[%c88, %c0_11] : memref<744x96xf32, #tpu.memory_space<vmem>>, vector<1x32xf32>
    %23 = vector.broadcast %22 : vector<1x32xf32> to vector<16x32xf32>
    %24 = arith.addf %21, %23 : vector<16x32xf32>
    %25 = arith.negf %24 : vector<16x32xf32>
    %26 = math.exp %25 : vector<16x32xf32>
    %cst_12 = arith.constant 1.000000e+00 : f32
    %27 = vector.broadcast %cst_12 : f32 to vector<16x32xf32>
    %28 = arith.addf %27, %26 : vector<16x32xf32>
    %29 = arith.divf %27, %28 : vector<16x32xf32>
    %30 = arith.mulf %24, %29 : vector<16x32xf32>
    %c96 = arith.constant 96 : index
    %c0_13 = arith.constant 0 : index
    %31 = vector.load %arg3[%c96, %c0_13] : memref<744x96xf32, #tpu.memory_space<vmem>>, vector<32x32xf32>
    %cst_14 = arith.constant dense<0.000000e+00> : vector<16x32xf32>
    %32 = tpu.matmul %30, %31, %cst_14 {dimension_numbers = #tpu.dot_dimension_numbers<[1], [0], [0], [1], [0, 0, 1, 1], [], []>} : vector<16x32xf32>, vector<32x32xf32>, vector<16x32xf32> -> vector<16x32xf32>
    %c128 = arith.constant 128 : index
    %c0_15 = arith.constant 0 : index
    %33 = vector.load %arg3[%c128, %c0_15] : memref<744x96xf32, #tpu.memory_space<vmem>>, vector<1x32xf32>
    %34 = vector.broadcast %33 : vector<1x32xf32> to vector<16x32xf32>
    %35 = arith.addf %32, %34 : vector<16x32xf32>
    %c136 = arith.constant 136 : index
    %c0_16 = arith.constant 0 : index
    %36 = vector.load %arg3[%c136, %c0_16] : memref<744x96xf32, #tpu.memory_space<vmem>>, vector<8x32xf32>
    %c144 = arith.constant 144 : index
    %c0_17 = arith.constant 0 : index
    %37 = vector.load %arg3[%c144, %c0_17] : memref<744x96xf32, #tpu.memory_space<vmem>>, vector<8x32xf32>
    %38 = vector.shape_cast %35 : vector<16x32xf32> to vector<2x8x32xf32>
    %cst_18 = arith.constant dense<0.000000e+00> : vector<2x8xf32>
    %39 = vector.multi_reduction <add>, %38, %cst_18 [2] : vector<2x8x32xf32> to vector<2x8xf32>
    %40 = vector.shape_cast %39 : vector<2x8xf32> to vector<2x8x1xf32>
    %cst_19 = arith.constant 3.200000e+01 : f32
    %41 = vector.broadcast %cst_19 : f32 to vector<2x8x1xf32>
    %42 = arith.divf %40, %41 : vector<2x8x1xf32>
    %cst_20 = arith.constant dense<0.000000e+00> : vector<2x1xf32>
    %43 = vector.multi_reduction <add>, %42, %cst_20 [1] : vector<2x8x1xf32> to vector<2x1xf32>
    %44 = vector.shape_cast %43 : vector<2x1xf32> to vector<2x1x1xf32>
    %cst_21 = arith.constant 8.000000e+00 : f32
    %45 = vector.broadcast %cst_21 : f32 to vector<2x1x1xf32>
    %46 = arith.divf %44, %45 : vector<2x1x1xf32>
    %47 = vector.broadcast %46 : vector<2x1x1xf32> to vector<2x8x32xf32>
    %48 = arith.subf %38, %47 : vector<2x8x32xf32>
    %49 = arith.mulf %48, %48 : vector<2x8x32xf32>
    %cst_22 = arith.constant dense<0.000000e+00> : vector<2x8xf32>
    %50 = vector.multi_reduction <add>, %49, %cst_22 [2] : vector<2x8x32xf32> to vector<2x8xf32>
    %51 = vector.shape_cast %50 : vector<2x8xf32> to vector<2x8x1xf32>
    %cst_23 = arith.constant 3.200000e+01 : f32
    %52 = vector.broadcast %cst_23 : f32 to vector<2x8x1xf32>
    %53 = arith.divf %51, %52 : vector<2x8x1xf32>
    %cst_24 = arith.constant dense<0.000000e+00> : vector<2x1xf32>
    %54 = vector.multi_reduction <add>, %53, %cst_24 [1] : vector<2x8x1xf32> to vector<2x1xf32>
    %55 = vector.shape_cast %54 : vector<2x1xf32> to vector<2x1x1xf32>
    %cst_25 = arith.constant 8.000000e+00 : f32
    %56 = vector.broadcast %cst_25 : f32 to vector<2x1x1xf32>
    %57 = arith.divf %55, %56 : vector<2x1x1xf32>
    %cst_26 = arith.constant 9.99999974E-6 : f32
    %58 = vector.broadcast %cst_26 : f32 to vector<2x1x1xf32>
    %59 = arith.addf %57, %58 : vector<2x1x1xf32>
    %60 = math.rsqrt %59 : vector<2x1x1xf32>
    %61 = vector.broadcast %60 : vector<2x1x1xf32> to vector<2x8x32xf32>
    %62 = arith.mulf %48, %61 : vector<2x8x32xf32>
    %63 = vector.shape_cast %36 : vector<8x32xf32> to vector<1x8x32xf32>
    %64 = vector.broadcast %63 : vector<1x8x32xf32> to vector<2x8x32xf32>
    %65 = arith.mulf %62, %64 : vector<2x8x32xf32>
    %66 = vector.shape_cast %37 : vector<8x32xf32> to vector<1x8x32xf32>
    %67 = vector.broadcast %66 : vector<1x8x32xf32> to vector<2x8x32xf32>
    %68 = arith.addf %65, %67 : vector<2x8x32xf32>
    %69 = vector.shape_cast %68 : vector<2x8x32xf32> to vector<16x32xf32>
    %c152 = arith.constant 152 : index
    %c0_27 = arith.constant 0 : index
    %70 = vector.load %arg3[%c152, %c0_27] : memref<744x96xf32, #tpu.memory_space<vmem>>, vector<16x32xf32>
    %71 = arith.mulf %69, %70 : vector<16x32xf32>
    %c184 = arith.constant 184 : index
    %c0_28 = arith.constant 0 : index
    %72 = vector.load %arg3[%c184, %c0_28] : memref<744x96xf32, #tpu.memory_space<vmem>>, vector<32x32xf32>
    %cst_29 = arith.constant dense<0.000000e+00> : vector<16x32xf32>
    %73 = tpu.matmul %69, %72, %cst_29 {dimension_numbers = #tpu.dot_dimension_numbers<[1], [0], [0], [1], [0, 0, 1, 1], [], []>} : vector<16x32xf32>, vector<32x32xf32>, vector<16x32xf32> -> vector<16x32xf32>
    %c168 = arith.constant 168 : index
    %c0_30 = arith.constant 0 : index
    %74 = vector.load %arg3[%c168, %c0_30] : memref<744x96xf32, #tpu.memory_space<vmem>>, vector<16x32xf32>
    %75 = arith.mulf %73, %74 : vector<16x32xf32>
    %76 = arith.addf %71, %75 : vector<16x32xf32>
    %c216 = arith.constant 216 : index
    %c0_31 = arith.constant 0 : index
    %77 = vector.load %arg3[%c216, %c0_31] : memref<744x96xf32, #tpu.memory_space<vmem>>, vector<1x32xf32>
    %c224 = arith.constant 224 : index
    %c0_32 = arith.constant 0 : index
    %78 = vector.load %arg3[%c224, %c0_32] : memref<744x96xf32, #tpu.memory_space<vmem>>, vector<1x32xf32>
    %cst_33 = arith.constant dense<0.000000e+00> : vector<16xf32>
    %79 = vector.multi_reduction <add>, %76, %cst_33 [1] : vector<16x32xf32> to vector<16xf32>
    %80 = vector.shape_cast %79 : vector<16xf32> to vector<16x1xf32>
    %cst_34 = arith.constant 3.200000e+01 : f32
    %81 = vector.broadcast %cst_34 : f32 to vector<16x1xf32>
    %82 = arith.divf %80, %81 : vector<16x1xf32>
    %83 = vector.broadcast %82 : vector<16x1xf32> to vector<16x32xf32>
    %84 = arith.subf %76, %83 : vector<16x32xf32>
    %85 = arith.mulf %84, %84 : vector<16x32xf32>
    %cst_35 = arith.constant dense<0.000000e+00> : vector<16xf32>
    %86 = vector.multi_reduction <add>, %85, %cst_35 [1] : vector<16x32xf32> to vector<16xf32>
    %87 = vector.shape_cast %86 : vector<16xf32> to vector<16x1xf32>
    %cst_36 = arith.constant 3.200000e+01 : f32
    %88 = vector.broadcast %cst_36 : f32 to vector<16x1xf32>
    %89 = arith.divf %87, %88 : vector<16x1xf32>
    %90 = vector.broadcast %82 : vector<16x1xf32> to vector<16x32xf32>
    %91 = arith.subf %76, %90 : vector<16x32xf32>
    %cst_37 = arith.constant 9.99999974E-6 : f32
    %92 = vector.broadcast %cst_37 : f32 to vector<16x1xf32>
    %93 = arith.addf %89, %92 : vector<16x1xf32>
    %94 = math.rsqrt %93 : vector<16x1xf32>
    %95 = vector.broadcast %94 : vector<16x1xf32> to vector<16x32xf32>
    %96 = arith.mulf %91, %95 : vector<16x32xf32>
    %97 = vector.broadcast %77 : vector<1x32xf32> to vector<16x32xf32>
    %98 = arith.mulf %96, %97 : vector<16x32xf32>
    %99 = vector.broadcast %78 : vector<1x32xf32> to vector<16x32xf32>
    %100 = arith.addf %98, %99 : vector<16x32xf32>
    %c232 = arith.constant 232 : index
    %c0_38 = arith.constant 0 : index
    %101 = vector.load %arg3[%c232, %c0_38] : memref<744x96xf32, #tpu.memory_space<vmem>>, vector<32x96xf32>
    %cst_39 = arith.constant dense<0.000000e+00> : vector<16x96xf32>
    %102 = tpu.matmul %100, %101, %cst_39 {dimension_numbers = #tpu.dot_dimension_numbers<[1], [0], [0], [1], [0, 0, 1, 1], [], []>} : vector<16x32xf32>, vector<32x96xf32>, vector<16x96xf32> -> vector<16x96xf32>
    %c264 = arith.constant 264 : index
    %c0_40 = arith.constant 0 : index
    %103 = vector.load %arg3[%c264, %c0_40] : memref<744x96xf32, #tpu.memory_space<vmem>>, vector<1x96xf32>
    %104 = vector.broadcast %103 : vector<1x96xf32> to vector<16x96xf32>
    %105 = arith.addf %102, %104 : vector<16x96xf32>
    %106 = vector.shape_cast %105 : vector<16x96xf32> to vector<2x8x96xf32>
    %107 = vector.extract_strided_slice %106 {offsets = [0, 0, 0], sizes = [2, 8, 16], strides = [1, 1, 1]} : vector<2x8x96xf32> to vector<2x8x16xf32>
    %108 = vector.extract_strided_slice %106 {offsets = [0, 0, 32], sizes = [2, 8, 16], strides = [1, 1, 1]} : vector<2x8x96xf32> to vector<2x8x16xf32>
    %109 = vector.extract_strided_slice %106 {offsets = [0, 0, 64], sizes = [2, 8, 16], strides = [1, 1, 1]} : vector<2x8x96xf32> to vector<2x8x16xf32>
    "tpu.trace_start"() <{level = 10 : i32, message = "bqd,bkd->bqk"}> : () -> ()
    %cst_41 = arith.constant dense<0.000000e+00> : vector<2x8x8xf32>
    %110 = tpu.matmul %107, %108, %cst_41 {dimension_numbers = #tpu.dot_dimension_numbers<[2], [2], [1], [1], [0, 0, 0, 1, 1, 1], [0], [0]>} : vector<2x8x16xf32>, vector<2x8x16xf32>, vector<2x8x8xf32> -> vector<2x8x8xf32>
    "tpu.trace_stop"() : () -> ()
    %cst_42 = arith.constant 2.500000e-01 : f32
    %111 = vector.broadcast %cst_42 : f32 to vector<2x8x8xf32>
    %112 = arith.mulf %110, %111 : vector<2x8x8xf32>
    %cst_43 = arith.constant dense<0xFF800000> : vector<2x8xf32>
    %113 = vector.multi_reduction <maximumf>, %112, %cst_43 [2] : vector<2x8x8xf32> to vector<2x8xf32>
    %114 = vector.shape_cast %113 : vector<2x8xf32> to vector<2x8x1xf32>
    %115 = vector.broadcast %114 : vector<2x8x1xf32> to vector<2x8x8xf32>
    %116 = arith.subf %112, %115 : vector<2x8x8xf32>
    %117 = math.exp %116 : vector<2x8x8xf32>
    %cst_44 = arith.constant dense<0.000000e+00> : vector<2x8xf32>
    %118 = vector.multi_reduction <add>, %117, %cst_44 [2] : vector<2x8x8xf32> to vector<2x8xf32>
    %119 = vector.shape_cast %118 : vector<2x8xf32> to vector<2x8x1xf32>
    %120 = tpu.reciprocal %119 {approx = true} : vector<2x8x1xf32> -> vector<2x8x1xf32>
    %121 = vector.broadcast %120 : vector<2x8x1xf32> to vector<2x8x8xf32>
    %122 = arith.mulf %117, %121 : vector<2x8x8xf32>
    "tpu.trace_start"() <{level = 10 : i32, message = "bqk,bkd->bqd"}> : () -> ()
    %cst_45 = arith.constant dense<0.000000e+00> : vector<2x8x16xf32>
    %123 = tpu.matmul %122, %109, %cst_45 {dimension_numbers = #tpu.dot_dimension_numbers<[2], [1], [1], [2], [0, 0, 0, 1, 1, 2], [0], [0]>} : vector<2x8x8xf32>, vector<2x8x16xf32>, vector<2x8x16xf32> -> vector<2x8x16xf32>
    "tpu.trace_stop"() : () -> ()
    %124 = vector.extract_strided_slice %106 {offsets = [0, 0, 16], sizes = [2, 8, 16], strides = [1, 1, 1]} : vector<2x8x96xf32> to vector<2x8x16xf32>
    %125 = vector.extract_strided_slice %106 {offsets = [0, 0, 48], sizes = [2, 8, 16], strides = [1, 1, 1]} : vector<2x8x96xf32> to vector<2x8x16xf32>
    %126 = vector.extract_strided_slice %106 {offsets = [0, 0, 80], sizes = [2, 8, 16], strides = [1, 1, 1]} : vector<2x8x96xf32> to vector<2x8x16xf32>
    "tpu.trace_start"() <{level = 10 : i32, message = "bqd,bkd->bqk"}> : () -> ()
    %cst_46 = arith.constant dense<0.000000e+00> : vector<2x8x8xf32>
    %127 = tpu.matmul %124, %125, %cst_46 {dimension_numbers = #tpu.dot_dimension_numbers<[2], [2], [1], [1], [0, 0, 0, 1, 1, 1], [0], [0]>} : vector<2x8x16xf32>, vector<2x8x16xf32>, vector<2x8x8xf32> -> vector<2x8x8xf32>
    "tpu.trace_stop"() : () -> ()
    %cst_47 = arith.constant 2.500000e-01 : f32
    %128 = vector.broadcast %cst_47 : f32 to vector<2x8x8xf32>
    %129 = arith.mulf %127, %128 : vector<2x8x8xf32>
    %cst_48 = arith.constant dense<0xFF800000> : vector<2x8xf32>
    %130 = vector.multi_reduction <maximumf>, %129, %cst_48 [2] : vector<2x8x8xf32> to vector<2x8xf32>
    %131 = vector.shape_cast %130 : vector<2x8xf32> to vector<2x8x1xf32>
    %132 = vector.broadcast %131 : vector<2x8x1xf32> to vector<2x8x8xf32>
    %133 = arith.subf %129, %132 : vector<2x8x8xf32>
    %134 = math.exp %133 : vector<2x8x8xf32>
    %cst_49 = arith.constant dense<0.000000e+00> : vector<2x8xf32>
    %135 = vector.multi_reduction <add>, %134, %cst_49 [2] : vector<2x8x8xf32> to vector<2x8xf32>
    %136 = vector.shape_cast %135 : vector<2x8xf32> to vector<2x8x1xf32>
    %137 = tpu.reciprocal %136 {approx = true} : vector<2x8x1xf32> -> vector<2x8x1xf32>
    %138 = vector.broadcast %137 : vector<2x8x1xf32> to vector<2x8x8xf32>
    %139 = arith.mulf %134, %138 : vector<2x8x8xf32>
    "tpu.trace_start"() <{level = 10 : i32, message = "bqk,bkd->bqd"}> : () -> ()
    %cst_50 = arith.constant dense<0.000000e+00> : vector<2x8x16xf32>
    %140 = tpu.matmul %139, %126, %cst_50 {dimension_numbers = #tpu.dot_dimension_numbers<[2], [1], [1], [2], [0, 0, 0, 1, 1, 2], [0], [0]>} : vector<2x8x8xf32>, vector<2x8x16xf32>, vector<2x8x16xf32> -> vector<2x8x16xf32>
    "tpu.trace_stop"() : () -> ()
    %141 = tpu.concatenate %123, %140 in 2 : vector<2x8x16xf32>, vector<2x8x16xf32> -> vector<2x8x32xf32>
    %142 = vector.shape_cast %141 : vector<2x8x32xf32> to vector<16x32xf32>
    %c272 = arith.constant 272 : index
    %c0_51 = arith.constant 0 : index
    %143 = vector.load %arg3[%c272, %c0_51] : memref<744x96xf32, #tpu.memory_space<vmem>>, vector<32x32xf32>
    %cst_52 = arith.constant dense<0.000000e+00> : vector<16x32xf32>
    %144 = tpu.matmul %142, %143, %cst_52 {dimension_numbers = #tpu.dot_dimension_numbers<[1], [0], [0], [1], [0, 0, 1, 1], [], []>} : vector<16x32xf32>, vector<32x32xf32>, vector<16x32xf32> -> vector<16x32xf32>
    %145 = arith.addf %76, %144 : vector<16x32xf32>
    %c304 = arith.constant 304 : index
    %c0_53 = arith.constant 0 : index
    %146 = vector.load %arg3[%c304, %c0_53] : memref<744x96xf32, #tpu.memory_space<vmem>>, vector<1x32xf32>
    %147 = vector.broadcast %146 : vector<1x32xf32> to vector<16x32xf32>
    %148 = arith.addf %145, %147 : vector<16x32xf32>
    %c312 = arith.constant 312 : index
    %c0_54 = arith.constant 0 : index
    %149 = vector.load %arg3[%c312, %c0_54] : memref<744x96xf32, #tpu.memory_space<vmem>>, vector<1x32xf32>
    %c320 = arith.constant 320 : index
    %c0_55 = arith.constant 0 : index
    %150 = vector.load %arg3[%c320, %c0_55] : memref<744x96xf32, #tpu.memory_space<vmem>>, vector<1x32xf32>
    %cst_56 = arith.constant dense<0.000000e+00> : vector<16xf32>
    %151 = vector.multi_reduction <add>, %148, %cst_56 [1] : vector<16x32xf32> to vector<16xf32>
    %152 = vector.shape_cast %151 : vector<16xf32> to vector<16x1xf32>
    %cst_57 = arith.constant 3.200000e+01 : f32
    %153 = vector.broadcast %cst_57 : f32 to vector<16x1xf32>
    %154 = arith.divf %152, %153 : vector<16x1xf32>
    %155 = vector.broadcast %154 : vector<16x1xf32> to vector<16x32xf32>
    %156 = arith.subf %148, %155 : vector<16x32xf32>
    %157 = arith.mulf %156, %156 : vector<16x32xf32>
    %cst_58 = arith.constant dense<0.000000e+00> : vector<16xf32>
    %158 = vector.multi_reduction <add>, %157, %cst_58 [1] : vector<16x32xf32> to vector<16xf32>
    %159 = vector.shape_cast %158 : vector<16xf32> to vector<16x1xf32>
    %cst_59 = arith.constant 3.200000e+01 : f32
    %160 = vector.broadcast %cst_59 : f32 to vector<16x1xf32>
    %161 = arith.divf %159, %160 : vector<16x1xf32>
    %162 = vector.broadcast %154 : vector<16x1xf32> to vector<16x32xf32>
    %163 = arith.subf %148, %162 : vector<16x32xf32>
    %cst_60 = arith.constant 9.99999974E-6 : f32
    %164 = vector.broadcast %cst_60 : f32 to vector<16x1xf32>
    %165 = arith.addf %161, %164 : vector<16x1xf32>
    %166 = math.rsqrt %165 : vector<16x1xf32>
    %167 = vector.broadcast %166 : vector<16x1xf32> to vector<16x32xf32>
    %168 = arith.mulf %163, %167 : vector<16x32xf32>
    %169 = vector.broadcast %149 : vector<1x32xf32> to vector<16x32xf32>
    %170 = arith.mulf %168, %169 : vector<16x32xf32>
    %171 = vector.broadcast %150 : vector<1x32xf32> to vector<16x32xf32>
    %172 = arith.addf %170, %171 : vector<16x32xf32>
    %c328 = arith.constant 328 : index
    %c0_61 = arith.constant 0 : index
    %173 = vector.load %arg3[%c328, %c0_61] : memref<744x96xf32, #tpu.memory_space<vmem>>, vector<32x32xf32>
    %cst_62 = arith.constant dense<0.000000e+00> : vector<16x32xf32>
    %174 = tpu.matmul %172, %173, %cst_62 {dimension_numbers = #tpu.dot_dimension_numbers<[1], [0], [0], [1], [0, 0, 1, 1], [], []>} : vector<16x32xf32>, vector<32x32xf32>, vector<16x32xf32> -> vector<16x32xf32>
    %c360 = arith.constant 360 : index
    %c0_63 = arith.constant 0 : index
    %175 = vector.load %arg3[%c360, %c0_63] : memref<744x96xf32, #tpu.memory_space<vmem>>, vector<1x32xf32>
    %176 = vector.broadcast %175 : vector<1x32xf32> to vector<16x32xf32>
    %177 = arith.addf %174, %176 : vector<16x32xf32>
    %178 = arith.negf %177 : vector<16x32xf32>
    %179 = math.exp %178 : vector<16x32xf32>
    %cst_64 = arith.constant 1.000000e+00 : f32
    %180 = vector.broadcast %cst_64 : f32 to vector<16x32xf32>
    %181 = arith.addf %180, %179 : vector<16x32xf32>
    %182 = arith.divf %180, %181 : vector<16x32xf32>
    %183 = arith.mulf %177, %182 : vector<16x32xf32>
    %c368 = arith.constant 368 : index
    %c0_65 = arith.constant 0 : index
    %184 = vector.load %arg3[%c368, %c0_65] : memref<744x96xf32, #tpu.memory_space<vmem>>, vector<32x32xf32>
    %cst_66 = arith.constant dense<0.000000e+00> : vector<16x32xf32>
    %185 = tpu.matmul %183, %184, %cst_66 {dimension_numbers = #tpu.dot_dimension_numbers<[1], [0], [0], [1], [0, 0, 1, 1], [], []>} : vector<16x32xf32>, vector<32x32xf32>, vector<16x32xf32> -> vector<16x32xf32>
    %186 = arith.addf %148, %185 : vector<16x32xf32>
    %c400 = arith.constant 400 : index
    %c0_67 = arith.constant 0 : index
    %187 = vector.load %arg3[%c400, %c0_67] : memref<744x96xf32, #tpu.memory_space<vmem>>, vector<1x32xf32>
    %188 = vector.broadcast %187 : vector<1x32xf32> to vector<16x32xf32>
    %189 = arith.addf %186, %188 : vector<16x32xf32>
    %c408 = arith.constant 408 : index
    %c0_68 = arith.constant 0 : index
    %190 = vector.load %arg3[%c408, %c0_68] : memref<744x96xf32, #tpu.memory_space<vmem>>, vector<1x32xf32>
    %c416 = arith.constant 416 : index
    %c0_69 = arith.constant 0 : index
    %191 = vector.load %arg3[%c416, %c0_69] : memref<744x96xf32, #tpu.memory_space<vmem>>, vector<1x32xf32>
    %cst_70 = arith.constant dense<0.000000e+00> : vector<16xf32>
    %192 = vector.multi_reduction <add>, %189, %cst_70 [1] : vector<16x32xf32> to vector<16xf32>
    %193 = vector.shape_cast %192 : vector<16xf32> to vector<16x1xf32>
    %cst_71 = arith.constant 3.200000e+01 : f32
    %194 = vector.broadcast %cst_71 : f32 to vector<16x1xf32>
    %195 = arith.divf %193, %194 : vector<16x1xf32>
    %196 = vector.broadcast %195 : vector<16x1xf32> to vector<16x32xf32>
    %197 = arith.subf %189, %196 : vector<16x32xf32>
    %198 = arith.mulf %197, %197 : vector<16x32xf32>
    %cst_72 = arith.constant dense<0.000000e+00> : vector<16xf32>
    %199 = vector.multi_reduction <add>, %198, %cst_72 [1] : vector<16x32xf32> to vector<16xf32>
    %200 = vector.shape_cast %199 : vector<16xf32> to vector<16x1xf32>
    %cst_73 = arith.constant 3.200000e+01 : f32
    %201 = vector.broadcast %cst_73 : f32 to vector<16x1xf32>
    %202 = arith.divf %200, %201 : vector<16x1xf32>
    %203 = vector.broadcast %195 : vector<16x1xf32> to vector<16x32xf32>
    %204 = arith.subf %189, %203 : vector<16x32xf32>
    %cst_74 = arith.constant 9.99999974E-6 : f32
    %205 = vector.broadcast %cst_74 : f32 to vector<16x1xf32>
    %206 = arith.addf %202, %205 : vector<16x1xf32>
    %207 = math.rsqrt %206 : vector<16x1xf32>
    %208 = vector.broadcast %207 : vector<16x1xf32> to vector<16x32xf32>
    %209 = arith.mulf %204, %208 : vector<16x32xf32>
    %210 = vector.broadcast %190 : vector<1x32xf32> to vector<16x32xf32>
    %211 = arith.mulf %209, %210 : vector<16x32xf32>
    %212 = vector.broadcast %191 : vector<1x32xf32> to vector<16x32xf32>
    %213 = arith.addf %211, %212 : vector<16x32xf32>
    %c424 = arith.constant 424 : index
    %c0_75 = arith.constant 0 : index
    %214 = vector.load %arg3[%c424, %c0_75] : memref<744x96xf32, #tpu.memory_space<vmem>>, vector<32x96xf32>
    %cst_76 = arith.constant dense<0.000000e+00> : vector<16x96xf32>
    %215 = tpu.matmul %213, %214, %cst_76 {dimension_numbers = #tpu.dot_dimension_numbers<[1], [0], [0], [1], [0, 0, 1, 1], [], []>} : vector<16x32xf32>, vector<32x96xf32>, vector<16x96xf32> -> vector<16x96xf32>
    %c456 = arith.constant 456 : index
    %c0_77 = arith.constant 0 : index
    %216 = vector.load %arg3[%c456, %c0_77] : memref<744x96xf32, #tpu.memory_space<vmem>>, vector<1x96xf32>
    %217 = vector.broadcast %216 : vector<1x96xf32> to vector<16x96xf32>
    %218 = arith.addf %215, %217 : vector<16x96xf32>
    %219 = vector.shape_cast %218 : vector<16x96xf32> to vector<2x8x96xf32>
    %220 = vector.extract_strided_slice %219 {offsets = [0, 0, 0], sizes = [2, 8, 16], strides = [1, 1, 1]} : vector<2x8x96xf32> to vector<2x8x16xf32>
    %221 = vector.extract_strided_slice %219 {offsets = [0, 0, 32], sizes = [2, 8, 16], strides = [1, 1, 1]} : vector<2x8x96xf32> to vector<2x8x16xf32>
    %222 = vector.extract_strided_slice %219 {offsets = [0, 0, 64], sizes = [2, 8, 16], strides = [1, 1, 1]} : vector<2x8x96xf32> to vector<2x8x16xf32>
    "tpu.trace_start"() <{level = 10 : i32, message = "bqd,bkd->bqk"}> : () -> ()
    %cst_78 = arith.constant dense<0.000000e+00> : vector<2x8x8xf32>
    %223 = tpu.matmul %220, %221, %cst_78 {dimension_numbers = #tpu.dot_dimension_numbers<[2], [2], [1], [1], [0, 0, 0, 1, 1, 1], [0], [0]>} : vector<2x8x16xf32>, vector<2x8x16xf32>, vector<2x8x8xf32> -> vector<2x8x8xf32>
    "tpu.trace_stop"() : () -> ()
    %cst_79 = arith.constant 2.500000e-01 : f32
    %224 = vector.broadcast %cst_79 : f32 to vector<2x8x8xf32>
    %225 = arith.mulf %223, %224 : vector<2x8x8xf32>
    %cst_80 = arith.constant dense<0xFF800000> : vector<2x8xf32>
    %226 = vector.multi_reduction <maximumf>, %225, %cst_80 [2] : vector<2x8x8xf32> to vector<2x8xf32>
    %227 = vector.shape_cast %226 : vector<2x8xf32> to vector<2x8x1xf32>
    %228 = vector.broadcast %227 : vector<2x8x1xf32> to vector<2x8x8xf32>
    %229 = arith.subf %225, %228 : vector<2x8x8xf32>
    %230 = math.exp %229 : vector<2x8x8xf32>
    %cst_81 = arith.constant dense<0.000000e+00> : vector<2x8xf32>
    %231 = vector.multi_reduction <add>, %230, %cst_81 [2] : vector<2x8x8xf32> to vector<2x8xf32>
    %232 = vector.shape_cast %231 : vector<2x8xf32> to vector<2x8x1xf32>
    %233 = tpu.reciprocal %232 {approx = true} : vector<2x8x1xf32> -> vector<2x8x1xf32>
    %234 = vector.broadcast %233 : vector<2x8x1xf32> to vector<2x8x8xf32>
    %235 = arith.mulf %230, %234 : vector<2x8x8xf32>
    "tpu.trace_start"() <{level = 10 : i32, message = "bqk,bkd->bqd"}> : () -> ()
    %cst_82 = arith.constant dense<0.000000e+00> : vector<2x8x16xf32>
    %236 = tpu.matmul %235, %222, %cst_82 {dimension_numbers = #tpu.dot_dimension_numbers<[2], [1], [1], [2], [0, 0, 0, 1, 1, 2], [0], [0]>} : vector<2x8x8xf32>, vector<2x8x16xf32>, vector<2x8x16xf32> -> vector<2x8x16xf32>
    "tpu.trace_stop"() : () -> ()
    %237 = vector.extract_strided_slice %219 {offsets = [0, 0, 16], sizes = [2, 8, 16], strides = [1, 1, 1]} : vector<2x8x96xf32> to vector<2x8x16xf32>
    %238 = vector.extract_strided_slice %219 {offsets = [0, 0, 48], sizes = [2, 8, 16], strides = [1, 1, 1]} : vector<2x8x96xf32> to vector<2x8x16xf32>
    %239 = vector.extract_strided_slice %219 {offsets = [0, 0, 80], sizes = [2, 8, 16], strides = [1, 1, 1]} : vector<2x8x96xf32> to vector<2x8x16xf32>
    "tpu.trace_start"() <{level = 10 : i32, message = "bqd,bkd->bqk"}> : () -> ()
    %cst_83 = arith.constant dense<0.000000e+00> : vector<2x8x8xf32>
    %240 = tpu.matmul %237, %238, %cst_83 {dimension_numbers = #tpu.dot_dimension_numbers<[2], [2], [1], [1], [0, 0, 0, 1, 1, 1], [0], [0]>} : vector<2x8x16xf32>, vector<2x8x16xf32>, vector<2x8x8xf32> -> vector<2x8x8xf32>
    "tpu.trace_stop"() : () -> ()
    %cst_84 = arith.constant 2.500000e-01 : f32
    %241 = vector.broadcast %cst_84 : f32 to vector<2x8x8xf32>
    %242 = arith.mulf %240, %241 : vector<2x8x8xf32>
    %cst_85 = arith.constant dense<0xFF800000> : vector<2x8xf32>
    %243 = vector.multi_reduction <maximumf>, %242, %cst_85 [2] : vector<2x8x8xf32> to vector<2x8xf32>
    %244 = vector.shape_cast %243 : vector<2x8xf32> to vector<2x8x1xf32>
    %245 = vector.broadcast %244 : vector<2x8x1xf32> to vector<2x8x8xf32>
    %246 = arith.subf %242, %245 : vector<2x8x8xf32>
    %247 = math.exp %246 : vector<2x8x8xf32>
    %cst_86 = arith.constant dense<0.000000e+00> : vector<2x8xf32>
    %248 = vector.multi_reduction <add>, %247, %cst_86 [2] : vector<2x8x8xf32> to vector<2x8xf32>
    %249 = vector.shape_cast %248 : vector<2x8xf32> to vector<2x8x1xf32>
    %250 = tpu.reciprocal %249 {approx = true} : vector<2x8x1xf32> -> vector<2x8x1xf32>
    %251 = vector.broadcast %250 : vector<2x8x1xf32> to vector<2x8x8xf32>
    %252 = arith.mulf %247, %251 : vector<2x8x8xf32>
    "tpu.trace_start"() <{level = 10 : i32, message = "bqk,bkd->bqd"}> : () -> ()
    %cst_87 = arith.constant dense<0.000000e+00> : vector<2x8x16xf32>
    %253 = tpu.matmul %252, %239, %cst_87 {dimension_numbers = #tpu.dot_dimension_numbers<[2], [1], [1], [2], [0, 0, 0, 1, 1, 2], [0], [0]>} : vector<2x8x8xf32>, vector<2x8x16xf32>, vector<2x8x16xf32> -> vector<2x8x16xf32>
    "tpu.trace_stop"() : () -> ()
    %254 = tpu.concatenate %236, %253 in 2 : vector<2x8x16xf32>, vector<2x8x16xf32> -> vector<2x8x32xf32>
    %255 = vector.shape_cast %254 : vector<2x8x32xf32> to vector<16x32xf32>
    %c464 = arith.constant 464 : index
    %c0_88 = arith.constant 0 : index
    %256 = vector.load %arg3[%c464, %c0_88] : memref<744x96xf32, #tpu.memory_space<vmem>>, vector<32x32xf32>
    %cst_89 = arith.constant dense<0.000000e+00> : vector<16x32xf32>
    %257 = tpu.matmul %255, %256, %cst_89 {dimension_numbers = #tpu.dot_dimension_numbers<[1], [0], [0], [1], [0, 0, 1, 1], [], []>} : vector<16x32xf32>, vector<32x32xf32>, vector<16x32xf32> -> vector<16x32xf32>
    %258 = arith.addf %189, %257 : vector<16x32xf32>
    %c496 = arith.constant 496 : index
    %c0_90 = arith.constant 0 : index
    %259 = vector.load %arg3[%c496, %c0_90] : memref<744x96xf32, #tpu.memory_space<vmem>>, vector<1x32xf32>
    %260 = vector.broadcast %259 : vector<1x32xf32> to vector<16x32xf32>
    %261 = arith.addf %258, %260 : vector<16x32xf32>
    %c504 = arith.constant 504 : index
    %c0_91 = arith.constant 0 : index
    %262 = vector.load %arg3[%c504, %c0_91] : memref<744x96xf32, #tpu.memory_space<vmem>>, vector<1x32xf32>
    %c512 = arith.constant 512 : index
    %c0_92 = arith.constant 0 : index
    %263 = vector.load %arg3[%c512, %c0_92] : memref<744x96xf32, #tpu.memory_space<vmem>>, vector<1x32xf32>
    %cst_93 = arith.constant dense<0.000000e+00> : vector<16xf32>
    %264 = vector.multi_reduction <add>, %261, %cst_93 [1] : vector<16x32xf32> to vector<16xf32>
    %265 = vector.shape_cast %264 : vector<16xf32> to vector<16x1xf32>
    %cst_94 = arith.constant 3.200000e+01 : f32
    %266 = vector.broadcast %cst_94 : f32 to vector<16x1xf32>
    %267 = arith.divf %265, %266 : vector<16x1xf32>
    %268 = vector.broadcast %267 : vector<16x1xf32> to vector<16x32xf32>
    %269 = arith.subf %261, %268 : vector<16x32xf32>
    %270 = arith.mulf %269, %269 : vector<16x32xf32>
    %cst_95 = arith.constant dense<0.000000e+00> : vector<16xf32>
    %271 = vector.multi_reduction <add>, %270, %cst_95 [1] : vector<16x32xf32> to vector<16xf32>
    %272 = vector.shape_cast %271 : vector<16xf32> to vector<16x1xf32>
    %cst_96 = arith.constant 3.200000e+01 : f32
    %273 = vector.broadcast %cst_96 : f32 to vector<16x1xf32>
    %274 = arith.divf %272, %273 : vector<16x1xf32>
    %275 = vector.broadcast %267 : vector<16x1xf32> to vector<16x32xf32>
    %276 = arith.subf %261, %275 : vector<16x32xf32>
    %cst_97 = arith.constant 9.99999974E-6 : f32
    %277 = vector.broadcast %cst_97 : f32 to vector<16x1xf32>
    %278 = arith.addf %274, %277 : vector<16x1xf32>
    %279 = math.rsqrt %278 : vector<16x1xf32>
    %280 = vector.broadcast %279 : vector<16x1xf32> to vector<16x32xf32>
    %281 = arith.mulf %276, %280 : vector<16x32xf32>
    %282 = vector.broadcast %262 : vector<1x32xf32> to vector<16x32xf32>
    %283 = arith.mulf %281, %282 : vector<16x32xf32>
    %284 = vector.broadcast %263 : vector<1x32xf32> to vector<16x32xf32>
    %285 = arith.addf %283, %284 : vector<16x32xf32>
    %c520 = arith.constant 520 : index
    %c0_98 = arith.constant 0 : index
    %286 = vector.load %arg3[%c520, %c0_98] : memref<744x96xf32, #tpu.memory_space<vmem>>, vector<32x32xf32>
    %cst_99 = arith.constant dense<0.000000e+00> : vector<16x32xf32>
    %287 = tpu.matmul %285, %286, %cst_99 {dimension_numbers = #tpu.dot_dimension_numbers<[1], [0], [0], [1], [0, 0, 1, 1], [], []>} : vector<16x32xf32>, vector<32x32xf32>, vector<16x32xf32> -> vector<16x32xf32>
    %c552 = arith.constant 552 : index
    %c0_100 = arith.constant 0 : index
    %288 = vector.load %arg3[%c552, %c0_100] : memref<744x96xf32, #tpu.memory_space<vmem>>, vector<1x32xf32>
    %289 = vector.broadcast %288 : vector<1x32xf32> to vector<16x32xf32>
    %290 = arith.addf %287, %289 : vector<16x32xf32>
    %291 = arith.negf %290 : vector<16x32xf32>
    %292 = math.exp %291 : vector<16x32xf32>
    %cst_101 = arith.constant 1.000000e+00 : f32
    %293 = vector.broadcast %cst_101 : f32 to vector<16x32xf32>
    %294 = arith.addf %293, %292 : vector<16x32xf32>
    %295 = arith.divf %293, %294 : vector<16x32xf32>
    %296 = arith.mulf %290, %295 : vector<16x32xf32>
    %c560 = arith.constant 560 : index
    %c0_102 = arith.constant 0 : index
    %297 = vector.load %arg3[%c560, %c0_102] : memref<744x96xf32, #tpu.memory_space<vmem>>, vector<32x32xf32>
    %cst_103 = arith.constant dense<0.000000e+00> : vector<16x32xf32>
    %298 = tpu.matmul %296, %297, %cst_103 {dimension_numbers = #tpu.dot_dimension_numbers<[1], [0], [0], [1], [0, 0, 1, 1], [], []>} : vector<16x32xf32>, vector<32x32xf32>, vector<16x32xf32> -> vector<16x32xf32>
    %299 = arith.addf %261, %298 : vector<16x32xf32>
    %c592 = arith.constant 592 : index
    %c0_104 = arith.constant 0 : index
    %300 = vector.load %arg3[%c592, %c0_104] : memref<744x96xf32, #tpu.memory_space<vmem>>, vector<1x32xf32>
    %301 = vector.broadcast %300 : vector<1x32xf32> to vector<16x32xf32>
    %302 = arith.addf %299, %301 : vector<16x32xf32>
    %c600 = arith.constant 600 : index
    %c0_105 = arith.constant 0 : index
    %303 = vector.load %arg3[%c600, %c0_105] : memref<744x96xf32, #tpu.memory_space<vmem>>, vector<32x64xf32>
    %cst_106 = arith.constant dense<0.000000e+00> : vector<16x64xf32>
    %304 = tpu.matmul %302, %303, %cst_106 {dimension_numbers = #tpu.dot_dimension_numbers<[1], [0], [0], [1], [0, 0, 1, 1], [], []>} : vector<16x32xf32>, vector<32x64xf32>, vector<16x64xf32> -> vector<16x64xf32>
    %c632 = arith.constant 632 : index
    %c0_107 = arith.constant 0 : index
    %305 = vector.load %arg3[%c632, %c0_107] : memref<744x96xf32, #tpu.memory_space<vmem>>, vector<1x64xf32>
    %306 = vector.broadcast %305 : vector<1x64xf32> to vector<16x64xf32>
    %307 = arith.addf %304, %306 : vector<16x64xf32>
    %308 = arith.negf %307 : vector<16x64xf32>
    %309 = math.exp %308 : vector<16x64xf32>
    %cst_108 = arith.constant 1.000000e+00 : f32
    %310 = vector.broadcast %cst_108 : f32 to vector<16x64xf32>
    %311 = arith.addf %310, %309 : vector<16x64xf32>
    %312 = arith.divf %310, %311 : vector<16x64xf32>
    %313 = arith.mulf %307, %312 : vector<16x64xf32>
    %c640 = arith.constant 640 : index
    %c0_109 = arith.constant 0 : index
    %314 = vector.load %arg3[%c640, %c0_109] : memref<744x96xf32, #tpu.memory_space<vmem>>, vector<64x64xf32>
    %cst_110 = arith.constant dense<0.000000e+00> : vector<16x64xf32>
    %315 = tpu.matmul %313, %314, %cst_110 {dimension_numbers = #tpu.dot_dimension_numbers<[1], [0], [0], [1], [0, 0, 1, 1], [], []>} : vector<16x64xf32>, vector<64x64xf32>, vector<16x64xf32> -> vector<16x64xf32>
    %c704 = arith.constant 704 : index
    %c0_111 = arith.constant 0 : index
    %316 = vector.load %arg3[%c704, %c0_111] : memref<744x96xf32, #tpu.memory_space<vmem>>, vector<1x64xf32>
    %317 = vector.broadcast %316 : vector<1x64xf32> to vector<16x64xf32>
    %318 = arith.addf %315, %317 : vector<16x64xf32>
    %319 = vector.extract_strided_slice %318 {offsets = [0, 0], sizes = [16, 32], strides = [1, 1]} : vector<16x64xf32> to vector<16x32xf32>
    %c712 = arith.constant 712 : index
    %c0_112 = arith.constant 0 : index
    %320 = vector.load %arg3[%c712, %c0_112] : memref<744x96xf32, #tpu.memory_space<vmem>>, vector<8x32xf32>
    %c720 = arith.constant 720 : index
    %c0_113 = arith.constant 0 : index
    %321 = vector.load %arg3[%c720, %c0_113] : memref<744x96xf32, #tpu.memory_space<vmem>>, vector<8x32xf32>
    %322 = vector.shape_cast %319 : vector<16x32xf32> to vector<2x8x32xf32>
    %cst_114 = arith.constant dense<0.000000e+00> : vector<2x8xf32>
    %323 = vector.multi_reduction <add>, %322, %cst_114 [2] : vector<2x8x32xf32> to vector<2x8xf32>
    %324 = vector.shape_cast %323 : vector<2x8xf32> to vector<2x8x1xf32>
    %cst_115 = arith.constant 3.200000e+01 : f32
    %325 = vector.broadcast %cst_115 : f32 to vector<2x8x1xf32>
    %326 = arith.divf %324, %325 : vector<2x8x1xf32>
    %cst_116 = arith.constant dense<0.000000e+00> : vector<2x1xf32>
    %327 = vector.multi_reduction <add>, %326, %cst_116 [1] : vector<2x8x1xf32> to vector<2x1xf32>
    %328 = vector.shape_cast %327 : vector<2x1xf32> to vector<2x1x1xf32>
    %cst_117 = arith.constant 8.000000e+00 : f32
    %329 = vector.broadcast %cst_117 : f32 to vector<2x1x1xf32>
    %330 = arith.divf %328, %329 : vector<2x1x1xf32>
    %331 = vector.broadcast %330 : vector<2x1x1xf32> to vector<2x8x32xf32>
    %332 = arith.subf %322, %331 : vector<2x8x32xf32>
    %333 = arith.mulf %332, %332 : vector<2x8x32xf32>
    %cst_118 = arith.constant dense<0.000000e+00> : vector<2x8xf32>
    %334 = vector.multi_reduction <add>, %333, %cst_118 [2] : vector<2x8x32xf32> to vector<2x8xf32>
    %335 = vector.shape_cast %334 : vector<2x8xf32> to vector<2x8x1xf32>
    %cst_119 = arith.constant 3.200000e+01 : f32
    %336 = vector.broadcast %cst_119 : f32 to vector<2x8x1xf32>
    %337 = arith.divf %335, %336 : vector<2x8x1xf32>
    %cst_120 = arith.constant dense<0.000000e+00> : vector<2x1xf32>
    %338 = vector.multi_reduction <add>, %337, %cst_120 [1] : vector<2x8x1xf32> to vector<2x1xf32>
    %339 = vector.shape_cast %338 : vector<2x1xf32> to vector<2x1x1xf32>
    %cst_121 = arith.constant 8.000000e+00 : f32
    %340 = vector.broadcast %cst_121 : f32 to vector<2x1x1xf32>
    %341 = arith.divf %339, %340 : vector<2x1x1xf32>
    %cst_122 = arith.constant 9.99999974E-6 : f32
    %342 = vector.broadcast %cst_122 : f32 to vector<2x1x1xf32>
    %343 = arith.addf %341, %342 : vector<2x1x1xf32>
    %344 = math.rsqrt %343 : vector<2x1x1xf32>
    %345 = vector.broadcast %344 : vector<2x1x1xf32> to vector<2x8x32xf32>
    %346 = arith.mulf %332, %345 : vector<2x8x32xf32>
    %347 = vector.shape_cast %320 : vector<8x32xf32> to vector<1x8x32xf32>
    %348 = vector.broadcast %347 : vector<1x8x32xf32> to vector<2x8x32xf32>
    %349 = arith.mulf %346, %348 : vector<2x8x32xf32>
    %350 = vector.shape_cast %321 : vector<8x32xf32> to vector<1x8x32xf32>
    %351 = vector.broadcast %350 : vector<1x8x32xf32> to vector<2x8x32xf32>
    %352 = arith.addf %349, %351 : vector<2x8x32xf32>
    %353 = vector.extract_strided_slice %318 {offsets = [0, 32], sizes = [16, 32], strides = [1, 1]} : vector<16x64xf32> to vector<16x32xf32>
    %c728 = arith.constant 728 : index
    %c0_123 = arith.constant 0 : index
    %354 = vector.load %arg3[%c728, %c0_123] : memref<744x96xf32, #tpu.memory_space<vmem>>, vector<8x32xf32>
    %c736 = arith.constant 736 : index
    %c0_124 = arith.constant 0 : index
    %355 = vector.load %arg3[%c736, %c0_124] : memref<744x96xf32, #tpu.memory_space<vmem>>, vector<8x32xf32>
    %356 = vector.shape_cast %353 : vector<16x32xf32> to vector<2x8x32xf32>
    %cst_125 = arith.constant dense<0.000000e+00> : vector<2x8xf32>
    %357 = vector.multi_reduction <add>, %356, %cst_125 [2] : vector<2x8x32xf32> to vector<2x8xf32>
    %358 = vector.shape_cast %357 : vector<2x8xf32> to vector<2x8x1xf32>
    %cst_126 = arith.constant 3.200000e+01 : f32
    %359 = vector.broadcast %cst_126 : f32 to vector<2x8x1xf32>
    %360 = arith.divf %358, %359 : vector<2x8x1xf32>
    %cst_127 = arith.constant dense<0.000000e+00> : vector<2x1xf32>
    %361 = vector.multi_reduction <add>, %360, %cst_127 [1] : vector<2x8x1xf32> to vector<2x1xf32>
    %362 = vector.shape_cast %361 : vector<2x1xf32> to vector<2x1x1xf32>
    %cst_128 = arith.constant 8.000000e+00 : f32
    %363 = vector.broadcast %cst_128 : f32 to vector<2x1x1xf32>
    %364 = arith.divf %362, %363 : vector<2x1x1xf32>
    %365 = vector.broadcast %364 : vector<2x1x1xf32> to vector<2x8x32xf32>
    %366 = arith.subf %356, %365 : vector<2x8x32xf32>
    %367 = arith.mulf %366, %366 : vector<2x8x32xf32>
    %cst_129 = arith.constant dense<0.000000e+00> : vector<2x8xf32>
    %368 = vector.multi_reduction <add>, %367, %cst_129 [2] : vector<2x8x32xf32> to vector<2x8xf32>
    %369 = vector.shape_cast %368 : vector<2x8xf32> to vector<2x8x1xf32>
    %cst_130 = arith.constant 3.200000e+01 : f32
    %370 = vector.broadcast %cst_130 : f32 to vector<2x8x1xf32>
    %371 = arith.divf %369, %370 : vector<2x8x1xf32>
    %cst_131 = arith.constant dense<0.000000e+00> : vector<2x1xf32>
    %372 = vector.multi_reduction <add>, %371, %cst_131 [1] : vector<2x8x1xf32> to vector<2x1xf32>
    %373 = vector.shape_cast %372 : vector<2x1xf32> to vector<2x1x1xf32>
    %cst_132 = arith.constant 8.000000e+00 : f32
    %374 = vector.broadcast %cst_132 : f32 to vector<2x1x1xf32>
    %375 = arith.divf %373, %374 : vector<2x1x1xf32>
    %cst_133 = arith.constant 9.99999974E-6 : f32
    %376 = vector.broadcast %cst_133 : f32 to vector<2x1x1xf32>
    %377 = arith.addf %375, %376 : vector<2x1x1xf32>
    %378 = math.rsqrt %377 : vector<2x1x1xf32>
    %379 = vector.broadcast %378 : vector<2x1x1xf32> to vector<2x8x32xf32>
    %380 = arith.mulf %366, %379 : vector<2x8x32xf32>
    %381 = vector.shape_cast %354 : vector<8x32xf32> to vector<1x8x32xf32>
    %382 = vector.broadcast %381 : vector<1x8x32xf32> to vector<2x8x32xf32>
    %383 = arith.mulf %380, %382 : vector<2x8x32xf32>
    %384 = vector.shape_cast %355 : vector<8x32xf32> to vector<1x8x32xf32>
    %385 = vector.broadcast %384 : vector<1x8x32xf32> to vector<2x8x32xf32>
    %386 = arith.addf %383, %385 : vector<2x8x32xf32>
    %cst_134 = arith.constant 5.000000e-01 : f32
    %387 = vector.broadcast %cst_134 : f32 to vector<2x8x32xf32>
    %388 = arith.mulf %386, %387 : vector<2x8x32xf32>
    %389 = math.exp %388 : vector<2x8x32xf32>
    %c0_135 = arith.constant 0 : index
    %c0_136 = arith.constant 0 : index
    %c0_137 = arith.constant 0 : index
    %390 = vector.load %arg2[%c0_135, %c0_136, %c0_137] : memref<2x8x32xf32, #tpu.memory_space<vmem>>, vector<2x8x32xf32>
    %391 = arith.mulf %389, %390 : vector<2x8x32xf32>
    %392 = arith.addf %352, %391 : vector<2x8x32xf32>
    %c0_138 = arith.constant 0 : index
    %c0_139 = arith.constant 0 : index
    %c0_140 = arith.constant 0 : index
    %c0_141 = arith.constant 0 : index
    %393 = vector.load %arg4[%c0_138, %c0_139, %c0_140, %c0_141] : memref<3x2x8x32xf32, #tpu.memory_space<vmem>>, vector<1x2x8x32xf32>
    %394 = vector.shape_cast %393 : vector<1x2x8x32xf32> to vector<2x8x32xf32>
    %395 = vector.shape_cast %392 : vector<2x8x32xf32> to vector<1x2x8x32xf32>
    tpu.vector_store %arg4[%c0_138, %c0_139, %c0_140, %c0_141], %395 {strides = array<i32>} : memref<3x2x8x32xf32, #tpu.memory_space<vmem>>, vector<1x2x8x32xf32>,
    %c1 = arith.constant 1 : index
    %c0_142 = arith.constant 0 : index
    %c0_143 = arith.constant 0 : index
    %c0_144 = arith.constant 0 : index
    %396 = vector.load %arg4[%c1, %c0_142, %c0_143, %c0_144] : memref<3x2x8x32xf32, #tpu.memory_space<vmem>>, vector<1x2x8x32xf32>
    %397 = vector.shape_cast %396 : vector<1x2x8x32xf32> to vector<2x8x32xf32>
    %398 = vector.shape_cast %352 : vector<2x8x32xf32> to vector<1x2x8x32xf32>
    tpu.vector_store %arg4[%c1, %c0_142, %c0_143, %c0_144], %398 {strides = array<i32>} : memref<3x2x8x32xf32, #tpu.memory_space<vmem>>, vector<1x2x8x32xf32>,
    %c2 = arith.constant 2 : index
    %c0_145 = arith.constant 0 : index
    %c0_146 = arith.constant 0 : index
    %c0_147 = arith.constant 0 : index
    %399 = vector.load %arg4[%c2, %c0_145, %c0_146, %c0_147] : memref<3x2x8x32xf32, #tpu.memory_space<vmem>>, vector<1x2x8x32xf32>
    %400 = vector.shape_cast %399 : vector<1x2x8x32xf32> to vector<2x8x32xf32>
    %401 = vector.shape_cast %386 : vector<2x8x32xf32> to vector<1x2x8x32xf32>
    tpu.vector_store %arg4[%c2, %c0_145, %c0_146, %c0_147], %401 {strides = array<i32>} : memref<3x2x8x32xf32, #tpu.memory_space<vmem>>, vector<1x2x8x32xf32>,
    return
  }
  func.func @transform_0(%arg0: i32) -> (i32, i32) {
    %c0_i32 = arith.constant 0 : i32
    %c0_i32_0 = arith.constant 0 : i32
    %c0_i32_1 = arith.constant 0 : i32
    return %c0_i32, %c0_i32_0 : i32, i32
  }
  func.func @transform_1(%arg0: i32) -> (i32, i32, i32) {
    %c0_i32 = arith.constant 0 : i32
    %c0_i32_0 = arith.constant 0 : i32
    %c0_i32_1 = arith.constant 0 : i32
    %c0_i32_2 = arith.constant 0 : i32
    return %c0_i32, %c0_i32_0, %c0_i32_1 : i32, i32, i32
  }
  func.func @transform_2(%arg0: i32) -> (i32, i32) {
    %c0_i32 = arith.constant 0 : i32
    %c0_i32_0 = arith.constant 0 : i32
    %c0_i32_1 = arith.constant 0 : i32
    return %c0_i32, %c0_i32_0 : i32, i32
  }
  func.func @transform_3(%arg0: i32) -> (i32, i32, i32, i32) {
    %c0_i32 = arith.constant 0 : i32
    %c0_i32_0 = arith.constant 0 : i32
    %c0_i32_1 = arith.constant 0 : i32
    %c0_i32_2 = arith.constant 0 : i32
    %c0_i32_3 = arith.constant 0 : i32
    return %c0_i32, %c0_i32_0, %c0_i32_1, %c0_i32_2 : i32, i32, i32, i32
  }
}

</mosaic_0001>

<bundles_post_ra>
// kernel: tpu_custom_call.1
= control target key start
LH: loop header
LB: loop body
LE: loop exit
PB: predicated region body
PF: predicated region fallthrough
CT: control target
= control target key end

     0   :  { %vm25_vm0 = vcmask 1041408   ;;  %vm18_vm1 = vcmask 15360   ;;  %v2155_v5 = vmov 0   ;;  %s2732_s0 = inlined_call_operand.vmem [shape: f32[2,4], index: 0, kind: input, shape index: {}]   ;;  %s2733_s1 = inlined_call_operand.vmem [shape: f32[2,8,32], index: 1, kind: input, shape index: {}]   ;;  %s2734_s2 = inlined_call_operand.vmem [shape: f32[744,96], index: 2, kind: input, shape index: {}]   ;;  %s2735_s3 = inlined_call_operand.hbm [shape: f32[3,2,8,32], index: 3, kind: output, shape index: {}]  }
   0x1   :  { %v15_v0 = vld [vmem:[%s2732_s0] sm:$0x3]  ;;  %v17_v2 = vld [vmem:[%s2734_s2 + $0x8] sm:$0xff]  ;;  %v53_v3 = vld [vmem:[%s2734_s2 + $0x18] sm:$0xff]  ;;  %1978 = vset.pattern.permute.xlu0 %v2155_v5  ;;  %1979 = vset.pattern.permute.xlu1 %v2155_v5 }
   0x2   :  { %v16_v1 = vld [vmem:[%s2734_s2] sm:$0xff]  ;;  %1898 = vmatpush.msk.msra.mxu0 %vm25_vm0, %v15_v0  ;;  %1964 = vmatpush.msk.msra.mxu2 %vm25_vm0, %v15_v0  ;;  %v67_v4 = vld [vmem:[%s2734_s2 + $0x28] sm:$0xff]  ;;  %v52_v6 = vld [vmem:[%s2734_s2 + $0x10] sm:$0xff] }
   0x3   :  { %1899 = vmatmul.msk.f32.vlgmr.msra.gmra.mxu0 %vm18_vm1, %v16_v1  ;;  %1900 = vmatmul.msk.f32.vlgmr.msra.gmra.mxu2 %vm18_vm1, %v17_v2  ;;  %v66_v7 = vld [vmem:[%s2734_s2 + $0x20] sm:$0xff] }
   0x4   :  { %61 = vperm.xlu0 %1978, %v53_v3   ;;  %75 = vperm.xlu1 %1979, %v67_v4  }
   0x5   :  { %1980 = vset.pattern.permute.xlu2 %v2155_v5 }
   0x6   :  { %8 = vsyncpa [#allocation3], 0  ;;  %v122_v24 = vld [vmem:[%s2734_s2 + $0x40] sm:$0xff]  ;;  %v123_v28 = vld [vmem:[%s2734_s2 + $0x48] sm:$0xff]  ;;  %vm134_vm10 = vcmask 130048   ;;  %vm174_vm11 = vcmask 1043456  }
   0x7   :  { %126 = vperm.xlu2 %1980, %v122_v24   ;;  %v120_v48 = vld [vmem:[%s2734_s2 + $0x30] sm:$0xff]  ;;  %v121_v49 = vld [vmem:[%s2734_s2 + $0x38] sm:$0xff]  ;;  %vm167_vm12 = vcmask 31744   ;;  %v242_v60 = vld [vmem:[%s2734_s2 + $0x68] sm:$0xff]  ;;  %vm247_vm1 = vcmask 261120   ;;  %s2158_s25 = smov 96  }
   0x8   :  { %v164_v50 = vld [vmem:[%s2734_s2 + $0x50] sm:$0xf]  ;;  %v244_v57 = vld [vmem:[%s2734_s2 + $0x78] sm:$0xff]  ;;  %v241_v61 = vld [vmem:[%s2734_s2 + $0x60] sm:$0xff]  ;;  %s2159_s26 = smov 80   ;;  %s2160_s27 = smov 112  }
   0x9   :  { %1905 = vmatpush.msk.msrb.mxu2 %vm174_vm11, %v164_v50  ;;  %266 = vmatpush.msra.mxu3 %v244_v57  ;;  %v243_v58 = vld [vmem:[%s2734_s2 + $0x70] sm:$0xff]  ;;  %v2001_v59 = vld [vmem:[%s2734_s2 + $0x58] ss:$0 sm:$0xff]  ;;  %s2161_s28 = smov 64   ;;  %s2162_s29 = smov 48  }
   0xa   :  { %s2163_s9 = smov 16   ;;  %s2164_s13 = smov 32  }
   0xb   :  { %267 = vmatpush.msra.mxu3 %v243_v58  ;;  %s1886_s24 = sshll.u32 %s2735_s3, 4  ;;  %s2166_s30 = smov 128   ;;  %s1887_s24 = int_to_ptr.hbm [resolvable:$true] %s1886_s24 }
   0xc   :  { %56 = vperm.xlu0 %1978, %v52_v6   ;;  %70 = vperm.xlu1 %1979, %v66_v7   ;;  %s2167_s4 = smov 8  }
   0xd   :  { %268 = vmatpush.msra.mxu3 %v242_v60 }
   0xf   :  { %131 = vperm.xlu2 %1980, %v123_v28   ;;  %269 = vmatpush.msra.mxu3 %v241_v61 }
  0x61   :  { %v127_v51 = vpop.permute.xlu2 %126 }
  0x69   :  { %v132_v54 = vpop.permute.xlu2 %131 }
  0x76   :  { %v62_v8 = vpop.permute.xlu0 %61  ;;  %v76_v9 = vpop.permute.xlu1 %75 }
  0x7e   :  { %v57_v10 = vpop.permute.xlu0 %56  ;;  %v71_v12 = vpop.permute.xlu1 %70 }
  0x80   :  { %v46_v11 = vpop.f32.mrf.mxu0 }
  0x81   :  { %v64_v13 = vmul.f32 %v57_v10, %v46_v11 }
  0x83   :  { %v78_v14 = vadd.f32 %v71_v12, %v64_v13 }
  0x85   :  { %v1901_v15 = vmul.f32 -1.442695, %v78_v14 }
  0x86   :  { %v49_v16 = vpop.f32.mrf.mxu2 }
  0x87   :  { %2021 = vpow2.f32 %v1901_v15  ;;  %v65_v17 = vmul.f32 %v62_v8, %v49_v16 }
  0x89   :  { %v79_v18 = vadd.f32 %v76_v9, %v65_v17 }
  0x8b   :  { %v1902_v19 = vmul.f32 -1.442695, %v79_v18 }
  0x8d   :  { %v2022_v20 = vpop.eup %2021  ;;  %2023 = vpow2.f32 %v1902_v19 }
  0x8e   :  { %v86_v21 = vadd.f32 1.0, %v2022_v20 }
  0x90   :  { %2025 = vrcp.f32 %v86_v21  ;;  %vm93_vm3 = vweird.f32 %v86_v21  ;;  %v99_v35 = vand.u32 2147483648, %v86_v21  ;;  %v97_v38 = vand.u32 2147483647, %v86_v21 }
  0x92   :  { %v100_v42 = vor.u32 1.1754944e-38, %v99_v35  ;;  %vm98_vm9 = vcmp.eq.f32.partialorder %v97_v38, 8.507059e+37 }
  0x93   :  { %v2024_v22 = vpop.eup %2023 }
  0x94   :  { %v87_v23 = vadd.f32 1.0, %v2024_v22 }
  0x96   :  { %v2026_v25 = vpop.eup %2025  ;;  %2027 = vrcp.f32 %v87_v23  ;;  %v114_v34 = vand.u32 2147483648, %v87_v23  ;;  %v112_v37 = vand.u32 2147483647, %v87_v23  ;;  %vm108_vm6 = vweird.f32 %v87_v23 }
  0x97   :  { %v89_v26 = vmul.f32 %v2026_v25, %v86_v21  ;;  %vm94_vm2 = vweird.f32 %v2026_v25 }
  0x98   :  { %vm95_vm5 = vmor %vm93_vm3, %vm94_vm2  ;;  %v115_v41 = vor.u32 1.1754944e-38, %v114_v34  ;;  %vm113_vm8 = vcmp.eq.f32.partialorder %v112_v37, 8.507059e+37  ;;  %v2156_v37 = vmov 32.0  }
  0x99   :  { %v90_v27 = vsub.f32 1.0, %v89_v26 }
  0x9b   :  { %v91_v29 = vmul.f32 %v2026_v25, %v90_v27 }
  0x9c   :  { %v2028_v30 = vpop.eup %2027 }
  0x9d   :  { %v104_v31 = vmul.f32 %v2028_v30, %v87_v23  ;;  %v92_v33 = vadd.f32 %v2026_v25, %v91_v29  ;;  %vm109_vm4 = vweird.f32 %v2028_v30 }
  0x9e   :  { %vm110_vm7 = vmor %vm108_vm6, %vm109_vm4 }
  0x9f   :  { %v105_v32 = vsub.f32 1.0, %v104_v31  ;;  %v96_v40 = vsel %vm95_vm5, %v2026_v25, %v92_v33 }
  0xa0   :  { %v101_v45 = vsel %vm98_vm9, %v100_v42, %v96_v40 }
  0xa1   :  { %v106_v36 = vmul.f32 %v2028_v30, %v105_v32  ;;  %v118_v47 = vmul.f32 %v101_v45, %v78_v14 }
  0xa3   :  { %v107_v39 = vadd.f32 %v2028_v30, %v106_v36 }
  0xa5   :  { %v111_v43 = vsel %vm110_vm7, %v2028_v30, %v107_v39  ;;  %v2002_v30 = vld [vmem:[%s2734_s2 + $0x80] ss:$0 sm:$0xff] }
  0xa6   :  { %v116_v44 = vsel %vm113_vm8, %v115_v41, %v111_v43  ;;  %v2157_v41 = vmov 8.0  }
  0xa7   :  { %v119_v46 = vmul.f32 %v116_v44, %v79_v18 }
  0xa9   :  { %155 = vmatpush.msra.mxu1 %v119_v46 }
  0xab   :  { %156 = vmatpush.msra.mxu1 %v118_v47 }
  0xac   :  { %1903 = vmatmul.msk.f32.vlgmr.msra.gmra.mxu1 %vm134_vm10, %v120_v48 }
  0xb4   :  { %1904 = vmatmul.msk.f32.gmra.mxu1 %vm134_vm10, %v121_v49 }
 0x129   :  { %v158_v52 = vpop.f32.mrf.mxu1 }
 0x12a   :  { %v159_v53 = vadd.f32 %v158_v52, %v127_v51 }
 0x12c   :  { %1906 = vmatmul.msk.f32.vlgmr.msrb.gmra.mxu2 %vm167_vm12, %v159_v53 }
 0x131   :  { %v161_v55 = vpop.f32.mrf.mxu1 }
 0x132   :  { %v162_v56 = vadd.f32 %v161_v55, %v132_v54 }
 0x134   :  { %1907 = vmatmul.msk.f32.gmra.mxu2 %vm167_vm12, %v162_v56 }
 0x1af   :  { %v195_v62 = vpop.f32.mrf.mxu2 }
 0x1b0   :  { %v196_v63 = vadd.f32 %v2001_v59, %v195_v62 }
 0x1b2   :  { %v1908_v0 = vmul.f32 -1.442695, %v196_v63 }
 0x1b4   :  { %2029 = vpow2.f32 %v1908_v0 }
 0x1b7   :  { %v198_v1 = vpop.f32.mrf.mxu2 }
 0x1b8   :  { %v199_v2 = vadd.f32 %v2001_v59, %v198_v1 }
 0x1ba   :  { %v2030_v3 = vpop.eup %2029  ;;  %v1909_v4 = vmul.f32 -1.442695, %v199_v2 }
 0x1bb   :  { %v207_v5 = vadd.f32 1.0, %v2030_v3 }
 0x1bc   :  { %2031 = vpow2.f32 %v1909_v4 }
 0x1bd   :  { %2033 = vrcp.f32 %v207_v5  ;;  %v220_v11 = vand.u32 2147483648, %v207_v5  ;;  %v218_v13 = vand.u32 2147483647, %v207_v5  ;;  %vm214_vm14 = vweird.f32 %v207_v5 }
 0x1bf   :  { %v221_v16 = vor.u32 1.1754944e-38, %v220_v11  ;;  %vm219_vm0 = vcmp.eq.f32.partialorder %v218_v13, 8.507059e+37 }
 0x1c2   :  { %v2032_v6 = vpop.eup %2031 }
 0x1c3   :  { %v2034_v7 = vpop.eup %2033  ;;  %v208_v8 = vadd.f32 1.0, %v2032_v6 }
 0x1c4   :  { %v210_v9 = vmul.f32 %v2034_v7, %v207_v5  ;;  %vm215_vm13 = vweird.f32 %v2034_v7 }
 0x1c5   :  { %2035 = vrcp.f32 %v208_v8  ;;  %vm216_vm15 = vmor %vm214_vm14, %vm215_vm13  ;;  %v235_v22 = vand.u32 2147483648, %v208_v8  ;;  %v233_v24 = vand.u32 2147483647, %v208_v8  ;;  %vm229_vm3 = vweird.f32 %v208_v8 }
 0x1c6   :  { %v211_v10 = vsub.f32 1.0, %v210_v9  ;;  %2037 = vrcp.f32 %v2156_v37 }
 0x1c7   :  { %v236_v26 = vor.u32 1.1754944e-38, %v235_v22  ;;  %vm234_vm5 = vcmp.eq.f32.partialorder %v233_v24, 8.507059e+37  ;;  %2039 = vrcp.f32 %v2157_v41 }
 0x1c8   :  { %v212_v12 = vmul.f32 %v2034_v7, %v211_v10 }
 0x1ca   :  { %v213_v14 = vadd.f32 %v2034_v7, %v212_v12 }
 0x1cb   :  { %v2036_v15 = vpop.eup %2035 }
 0x1cc   :  { %v217_v17 = vsel %vm216_vm15, %v2034_v7, %v213_v14  ;;  %v225_v18 = vmul.f32 %v2036_v15, %v208_v8  ;;  %vm230_vm2 = vweird.f32 %v2036_v15  ;;  %v2038_v38 = vpop.eup %2037  ;;  %v376_v14 = vld [vmem:[%s2734_s2 + $0xd0] sm:$0xff] }
 0x1cd   :  { %v222_v19 = vsel %vm219_vm0, %v221_v16, %v217_v17  ;;  %vm231_vm4 = vmor %vm229_vm3, %vm230_vm2  ;;  %v286_v39 = vmul.f32 32.0, %v2038_v38  ;;  %v2040_v43 = vpop.eup %2039  ;;  %vm290_vm6 = vweird.f32 %v2038_v38  ;;  %395 = vmatpush.msrb.mxu0 %v376_v14  ;;  %v374_v17 = vld [vmem:[%s2734_s2 + $0xc0] sm:$0xff] }
 0x1ce   :  { %v239_v20 = vmul.f32 %v222_v19, %v196_v63  ;;  %v226_v21 = vsub.f32 1.0, %v225_v18  ;;  %v307_v45 = vmul.f32 8.0, %v2040_v43  ;;  %vm311_vm7 = vweird.f32 %v2040_v43  ;;  %v373_v19 = vld [vmem:[%s2734_s2 + $0xb8] sm:$0xff] }
 0x1cf   :  { %v287_v40 = vsub.f32 1.0, %v286_v39 }
 0x1d0   :  { %v227_v23 = vmul.f32 %v2036_v15, %v226_v21  ;;  %1910 = vmatmul.msk.f32.vlgmr.msra.gmra.mxu3 %vm247_vm1, %v239_v20  ;;  %v308_v48 = vsub.f32 1.0, %v307_v45 }
 0x1d1   :  { %v288_v42 = vmul.f32 %v2038_v38, %v287_v40 }
 0x1d2   :  { %v228_v25 = vadd.f32 %v2036_v15, %v227_v23  ;;  %v309_v51 = vmul.f32 %v2040_v43, %v308_v48  ;;  %v278_v48 = vld [vmem:[%s2734_s2 + $0x90] sm:$0xff] }
 0x1d3   :  { %v289_v44 = vadd.f32 %v2038_v38, %v288_v42 }
 0x1d4   :  { %v232_v27 = vsel %vm231_vm4, %v2036_v15, %v228_v25  ;;  %v310_v55 = vadd.f32 %v2040_v43, %v309_v51  ;;  %v375_v15 = vld [vmem:[%s2734_s2 + $0xc8] sm:$0xff] }
 0x1d5   :  { %v237_v28 = vsel %vm234_vm5, %v236_v26, %v232_v27  ;;  %v2248_v46 = vsel %vm290_vm6, %v2038_v38, %v289_v44  ;;  %396 = vmatpush.msrb.mxu0 %v375_v15  ;;  %v277_v44 = vld [vmem:[%s2734_s2 + $0x88] sm:$0xff]  ;;  %vm555_vm6 = vcmask 64512  }
 0x1d6   :  { %v240_v29 = vmul.f32 %v237_v28, %v199_v2  ;;  %v2252_v60 = vsel %vm311_vm7, %v2040_v43, %v310_v55 }
 0x1d7   :  { %397 = vmatpush.msrb.mxu0 %v374_v17 }
 0x1d8   :  { %1911 = vmatmul.msk.f32.gmra.mxu3 %vm247_vm1, %v240_v29 }
 0x1d9   :  { %398 = vmatpush.msrb.mxu0 %v373_v19  ;;  %v467_v19 = vld [vmem:[%s2734_s2 + $0x100] sm:$0xff] }
 0x1da   :  { %488 = vmatpush.msra.mxu2 %v467_v19 }
 0x253   :  { %v271_v31 = vpop.f32.mrf.mxu3 }
 0x254   :  { %v272_v32 = vadd.f32 %v2002_v30, %v271_v31 }
 0x256   :  { %v279_v33 = vsel %vm247_vm1, %v272_v32, 0.0 }
 0x257   :  { %280 = vadd.xlane.f32.xlu0 %v279_v33 }
 0x25b   :  { %v274_v34 = vpop.f32.mrf.mxu3 }
 0x25c   :  { %v275_v35 = vadd.f32 %v2002_v30, %v274_v34 }
 0x25e   :  { %v282_v36 = vsel %vm247_vm1, %v275_v35, 0.0 }
 0x25f   :  { %283 = vadd.xlane.f32.xlu1 %v282_v36 }
 0x2ca   :  { %v281_v47 = vpop.xlane.xlu0 %280 }
 0x2cb   :  { %v292_v49 = vmul.f32 %v2248_v46, %v281_v47 }
 0x2cd   :  { %v294_v50 = vrot.slane %v292_v49, 4 }
 0x2cf   :  { %v295_v52 = vadd.f32 %v294_v50, %v292_v49 }
 0x2d1   :  { %v296_v53 = vrot.slane %v295_v52, 2 }
 0x2d2   :  { %v284_v54 = vpop.xlane.xlu1 %283 }
 0x2d3   :  { %v297_v56 = vadd.f32 %v296_v53, %v295_v52  ;;  %v293_v57 = vmul.f32 %v2248_v46, %v284_v54 }
 0x2d5   :  { %v298_v58 = vrot.slane %v297_v56, 1  ;;  %v300_v59 = vrot.slane %v293_v57, 4 }
 0x2d7   :  { %v299_v61 = vadd.f32 %v298_v58, %v297_v56  ;;  %v301_v62 = vadd.f32 %v300_v59, %v293_v57  ;;  %v369_v58 = vld [vmem:[%s2734_s2 + $0x98] sm:$0xff]  ;;  %v406_v59 = vld [vmem:[%s2734_s2 + $0xa8] sm:$0xff] }
 0x2d9   :  { %v302_v63 = vrot.slane %v301_v62, 2  ;;  %v313_v0 = vmul.f32 %v2252_v60, %v299_v61 }
 0x2db   :  { %v303_v1 = vadd.f32 %v302_v63, %v301_v62  ;;  %v315_v2 = vsub.f32 %v272_v32, %v313_v0 }
 0x2dd   :  { %v304_v3 = vrot.slane %v303_v1, 1  ;;  %v317_v4 = vmul.f32 %v315_v2, %v315_v2 }
 0x2df   :  { %v305_v5 = vadd.f32 %v304_v3, %v303_v1  ;;  %v319_v6 = vsel %vm247_vm1, %v317_v4, 0.0  ;;  %v407_v3 = vld [vmem:[%s2734_s2 + $0xb0] sm:$0xff] }
 0x2e0   :  { %320 = vadd.xlane.f32.xlu2 %v319_v6 }
 0x2e1   :  { %v314_v7 = vmul.f32 %v2252_v60, %v305_v5 }
 0x2e3   :  { %v316_v8 = vsub.f32 %v275_v35, %v314_v7 }
 0x2e5   :  { %v318_v9 = vmul.f32 %v316_v8, %v316_v8 }
 0x2e7   :  { %v322_v10 = vsel %vm247_vm1, %v318_v9, 0.0 }
 0x2e8   :  { %323 = vadd.xlane.f32.xlu2 %v322_v10 }
 0x353   :  { %v321_v11 = vpop.xlane.xlu2 %320 }
 0x354   :  { %v325_v12 = vmul.f32 %v321_v11, %v2248_v46 }
 0x356   :  { %v327_v13 = vrot.slane %v325_v12, 4 }
 0x358   :  { %v328_v16 = vadd.f32 %v327_v13, %v325_v12 }
 0x35a   :  { %v329_v18 = vrot.slane %v328_v16, 2 }
 0x35b   :  { %v324_v20 = vpop.xlane.xlu2 %323 }
 0x35c   :  { %v330_v21 = vadd.f32 %v329_v18, %v328_v16  ;;  %v326_v22 = vmul.f32 %v324_v20, %v2248_v46  ;;  %v466_v20 = vld [vmem:[%s2734_s2 + $0xf8] sm:$0xff] }
 0x35d   :  { %489 = vmatpush.msra.mxu2 %v466_v20 }
 0x35e   :  { %v331_v23 = vrot.slane %v330_v21, 1  ;;  %v333_v24 = vrot.slane %v326_v22, 4 }
 0x360   :  { %v332_v25 = vadd.f32 %v331_v23, %v330_v21  ;;  %v334_v26 = vadd.f32 %v333_v24, %v326_v22  ;;  %v465_v21 = vld [vmem:[%s2734_s2 + $0xf0] sm:$0xff]  ;;  %v464_v22 = vld [vmem:[%s2734_s2 + $0xe8] sm:$0xff] }
 0x361   :  { %490 = vmatpush.msra.mxu2 %v465_v21 }
 0x362   :  { %v339_v27 = vmul.f32 %v332_v25, %v2252_v60  ;;  %v335_v28 = vrot.slane %v334_v26, 2 }
 0x363   :  { %491 = vmatpush.msra.mxu2 %v464_v22 }
 0x364   :  { %v341_v29 = vadd.f32 1e-05, %v339_v27  ;;  %v336_v30 = vadd.f32 %v335_v28, %v334_v26 }
 0x366   :  { %2041 = vrsqrt.f32 %v341_v29  ;;  %v337_v31 = vrot.slane %v336_v30, 1  ;;  %vm349_vm9 = vweird.f32 %v341_v29 }
 0x368   :  { %v338_v32 = vadd.f32 %v337_v31, %v336_v30 }
 0x36a   :  { %v340_v33 = vmul.f32 %v338_v32, %v2252_v60 }
 0x36c   :  { %v2042_v34 = vpop.eup %2041  ;;  %v342_v35 = vadd.f32 1e-05, %v340_v33 }
 0x36d   :  { %v344_v36 = vmul.f32 %v2042_v34, %v341_v29  ;;  %vm350_vm8 = vweird.f32 %v2042_v34 }
 0x36e   :  { %2043 = vrsqrt.f32 %v342_v35  ;;  %vm351_vm11 = vmor %vm349_vm9, %vm350_vm8  ;;  %vm359_vm13 = vweird.f32 %v342_v35 }
 0x36f   :  { %v345_v37 = vmul.f32 %v2042_v34, %v344_v36 }
 0x371   :  { %v346_v38 = vmul.f32 0.5, %v345_v37  ;;  %v2003_v37 = vld [vmem:[%s2734_s2 + $0xd8] ss:$0 sm:$0xff] }
 0x373   :  { %v347_v39 = vsub.f32 1.5, %v346_v38 }
 0x374   :  { %v2044_v40 = vpop.eup %2043 }
 0x375   :  { %v354_v41 = vmul.f32 %v2044_v40, %v342_v35  ;;  %v348_v42 = vmul.f32 %v2042_v34, %v347_v39  ;;  %vm360_vm12 = vweird.f32 %v2044_v40 }
 0x376   :  { %vm361_vm14 = vmor %vm359_vm13, %vm360_vm12 }
 0x377   :  { %v355_v43 = vmul.f32 %v2044_v40, %v354_v41  ;;  %v352_v45 = vsel %vm351_vm11, %v2042_v34, %v348_v42  ;;  %v2004_v41 = vld [vmem:[%s2734_s2 + $0xe0] ss:$0 sm:$0xff] }
 0x378   :  { %v363_v47 = vmul.f32 %v352_v45, %v315_v2  ;;  %v370_v2 = vld [vmem:[%s2734_s2 + $0xa0] sm:$0xff] }
 0x379   :  { %v356_v49 = vmul.f32 0.5, %v355_v43 }
 0x37a   :  { %v365_v50 = vmul.f32 %v363_v47, %v277_v44 }
 0x37b   :  { %v357_v51 = vsub.f32 1.5, %v356_v49 }
 0x37c   :  { %v367_v52 = vadd.f32 %v365_v50, %v278_v48 }
 0x37d   :  { %v358_v53 = vmul.f32 %v2044_v40, %v357_v51 }
 0x37e   :  { %1912 = vmatmul.msk.f32.vlgmr.msrb.gmra.mxu0 %vm247_vm1, %v367_v52  ;;  %v371_v62 = vmul.f32 %v369_v58, %v367_v52  ;;  %v2005_v52 = vld [vmem:[%s2734_s2 + $0x108] ss:$0 sm:$0xff] }
 0x37f   :  { %v362_v54 = vsel %vm361_vm14, %v2044_v40, %v358_v53 }
 0x380   :  { %v364_v55 = vmul.f32 %v362_v54, %v316_v8 }
 0x382   :  { %v366_v56 = vmul.f32 %v364_v55, %v277_v44 }
 0x384   :  { %v368_v57 = vadd.f32 %v366_v56, %v278_v48 }
 0x386   :  { %1913 = vmatmul.msk.f32.gmra.mxu0 %vm247_vm1, %v368_v57  ;;  %v372_v5 = vmul.f32 %v370_v2, %v368_v57 }
 0x3fb   :  { %v400_v61 = vpop.f32.mrf.mxu0 }
 0x3fc   :  { %v408_v63 = vmul.f32 %v406_v59, %v400_v61 }
 0x3fe   :  { %v2288_v0 = vadd.f32 %v408_v63, %v371_v62 }
 0x400   :  { %v414_v1 = vsel %vm247_vm1, %v2288_v0, 0.0 }
 0x401   :  { %415 = vadd.xlane.f32.xlu0 %v414_v1 }
 0x403   :  { %v403_v4 = vpop.f32.mrf.mxu0 }
 0x404   :  { %v409_v6 = vmul.f32 %v407_v3, %v403_v4 }
 0x406   :  { %v2298_v7 = vadd.f32 %v409_v6, %v372_v5 }
 0x408   :  { %v417_v8 = vsel %vm247_vm1, %v2298_v7, 0.0 }
 0x409   :  { %418 = vadd.xlane.f32.xlu1 %v417_v8 }
 0x474   :  { %v416_v9 = vpop.xlane.xlu0 %415 }
 0x475   :  { %v420_v10 = vmul.f32 %v416_v9, %v2248_v46 }
 0x477   :  { %v422_v11 = vsub.f32 %v2288_v0, %v420_v10 }
 0x479   :  { %v424_v12 = vmul.f32 %v422_v11, %v422_v11 }
 0x47b   :  { %v426_v13 = vsel %vm247_vm1, %v424_v12, 0.0 }
 0x47c   :  { %427 = vadd.xlane.f32.xlu2 %v426_v13  ;;  %v419_v14 = vpop.xlane.xlu1 %418 }
 0x47d   :  { %v421_v15 = vmul.f32 %v419_v14, %v2248_v46 }
 0x47f   :  { %v423_v16 = vsub.f32 %v2298_v7, %v421_v15 }
 0x481   :  { %v425_v17 = vmul.f32 %v423_v16, %v423_v16 }
 0x483   :  { %v429_v18 = vsel %vm247_vm1, %v425_v17, 0.0 }
 0x484   :  { %430 = vadd.xlane.f32.xlu0 %v429_v18 }
 0x4ef   :  { %v428_v23 = vpop.xlane.xlu2 %427 }
 0x4f0   :  { %v432_v24 = vmul.f32 %v428_v23, %v2248_v46 }
 0x4f2   :  { %v434_v25 = vadd.f32 1e-05, %v432_v24 }
 0x4f4   :  { %2045 = vrsqrt.f32 %v434_v25  ;;  %vm442_vm0 = vweird.f32 %v434_v25 }
 0x4f7   :  { %v431_v26 = vpop.xlane.xlu0 %430 }
 0x4f8   :  { %v433_v27 = vmul.f32 %v431_v26, %v2248_v46 }
 0x4fa   :  { %v2046_v28 = vpop.eup %2045  ;;  %v435_v29 = vadd.f32 1e-05, %v433_v27 }
 0x4fb   :  { %v437_v30 = vmul.f32 %v2046_v28, %v434_v25  ;;  %vm443_vm15 = vweird.f32 %v2046_v28 }
 0x4fc   :  { %2047 = vrsqrt.f32 %v435_v29  ;;  %vm444_vm2 = vmor %vm442_vm0, %vm443_vm15  ;;  %vm452_vm4 = vweird.f32 %v435_v29 }
 0x4fd   :  { %v438_v31 = vmul.f32 %v2046_v28, %v437_v30 }
 0x4ff   :  { %v439_v32 = vmul.f32 0.5, %v438_v31 }
 0x501   :  { %v440_v33 = vsub.f32 1.5, %v439_v32 }
 0x502   :  { %v2048_v34 = vpop.eup %2047 }
 0x503   :  { %v441_v35 = vmul.f32 %v2046_v28, %v440_v33  ;;  %v447_v36 = vmul.f32 %v2048_v34, %v435_v29  ;;  %vm453_vm3 = vweird.f32 %v2048_v34 }
 0x504   :  { %vm454_vm5 = vmor %vm452_vm4, %vm453_vm3 }
 0x505   :  { %v445_v38 = vsel %vm444_vm2, %v2046_v28, %v441_v35  ;;  %v448_v39 = vmul.f32 %v2048_v34, %v447_v36 }
 0x506   :  { %v456_v40 = vmul.f32 %v445_v38, %v422_v11 }
 0x507   :  { %v449_v42 = vmul.f32 0.5, %v448_v39 }
 0x508   :  { %v459_v43 = vmul.f32 %v2003_v37, %v456_v40 }
 0x509   :  { %v450_v44 = vsub.f32 1.5, %v449_v42 }
 0x50a   :  { %v462_v45 = vadd.f32 %v2004_v41, %v459_v43 }
 0x50b   :  { %v451_v47 = vmul.f32 %v2048_v34, %v450_v44 }
 0x50c   :  { %1914 = vmatmul.msk.f32.vlgmr.msra.gmra.mxu2 %vm247_vm1, %v462_v45 }
 0x50d   :  { %v455_v48 = vsel %vm454_vm5, %v2048_v34, %v451_v47 }
 0x50e   :  { %v457_v49 = vmul.f32 %v455_v48, %v423_v16 }
 0x510   :  { %v460_v50 = vmul.f32 %v2003_v37, %v457_v49 }
 0x512   :  { %v463_v51 = vadd.f32 %v2004_v41, %v460_v50 }
 0x514   :  { %1915 = vmatmul.msk.f32.gmra.mxu2 %vm247_vm1, %v463_v51 }
 0x58f   :  { %v493_v53 = vpop.f32.mrf.mxu2 }
 0x590   :  { %v494_v54 = vadd.f32 %v2005_v52, %v493_v53 }
 0x592   :  { %500 = vrot.lane.b32.xlu2 %v494_v54, %s2158_s25 }
 0x597   :  { %v496_v55 = vpop.f32.mrf.mxu2 }
 0x598   :  { %v497_v56 = vadd.f32 %v2005_v52, %v496_v55  ;;  %v774_v55 = vld [vmem:[%s2734_s2 + $0x120] sm:$0xff] }
 0x59a   :  { %660 = vrot.lane.b32.xlu0 %v497_v56, %s2159_s26  ;;  %527 = vrot.lane.b32.xlu1 %v497_v56, %s2158_s25  ;;  %v1981_v19 = vpack.i.bf16 %v497_v56, %v494_v54 }
 0x59b   :  { %630 = vrot.lane.b32.xlu2 %v494_v54, %s2160_s27 }
 0x5a2   :  { %658 = vrot.lane.b32.xlu1 %v497_v56, %s2160_s27  ;;  %632 = vrot.lane.b32.xlu0 %v494_v54, %s2159_s26 }
 0x5ec   :  { %v501_v57 = vpop.permute.xlu2 %500 }
 0x5ed   :  { %1916 = vmatpush.xpose.msk.msrb.mxu1 %vm134_vm10, %v501_v57 }
 0x5f0   :  { %1917 = vmatmul.msk.f32.vlgmr.msrb.gmra.mxu1 %vm134_vm10, %v494_v54  ;;  %v775_v54 = vld [vmem:[%s2734_s2 + $0x128] sm:$0xff] }
 0x5f5   :  { %v631_v63 = vpop.permute.xlu2 %630 }
 0x60c   :  { %v661_v58 = vpop.permute.xlu0 %660  ;;  %v528_v59 = vpop.permute.xlu1 %527 }
 0x60d   :  { %1918 = vmatpush.xpose.msk.msrb.mxu3 %vm134_vm10, %v528_v59  ;;  %1924 = vmatpush.xpose.msk.msrb.mxu2 %vm134_vm10, %v661_v58 }
 0x610   :  { %1919 = vmatmul.msk.f32.vlgmr.msrb.gmra.mxu3 %vm134_vm10, %v497_v56  ;;  %v773_v56 = vld [vmem:[%s2734_s2 + $0x118] sm:$0xff] }
 0x614   :  { %v659_v61 = vpop.permute.xlu1 %658  ;;  %v633_v62 = vpop.permute.xlu0 %632 }
 0x615   :  { %1922 = vmatpush.xpose.msk.msra.mxu0 %vm134_vm10, %v633_v62  ;;  %1925 = vmatmul.msk.f32.vlgmr.msrb.gmra.mxu2 %vm134_vm10, %v659_v61  ;;  %v772_v62 = vld [vmem:[%s2734_s2 + $0x110] sm:$0xff] }
 0x618   :  { %1923 = vmatmul.msk.f32.vlgmr.msra.gmra.mxu0 %vm134_vm10, %v631_v63 }
 0x619   :  { %794 = vmatpush.msrb.mxu0 %v775_v54 }
 0x61b   :  { %795 = vmatpush.msrb.mxu0 %v774_v55  ;;  %v941_v55 = vld [vmem:[%s2734_s2 + $0x188] sm:$0xff] }
 0x61d   :  { %796 = vmatpush.msrb.mxu0 %v773_v56  ;;  %v940_v56 = vld [vmem:[%s2734_s2 + $0x180] sm:$0xff] }
 0x61f   :  { %797 = vmatpush.msrb.mxu0 %v772_v62 }
 0x66d   :  { %v523_v1 = vpop.f32.mrf.mxu1 }
 0x66e   :  { %v553_v2 = vmul.f32 0.25, %v523_v1 }
 0x670   :  { %v556_v3 = vsel %vm555_vm6, %v553_v2, -inf }
 0x671   :  { %557 = vmax.xlane.f32.xlu1 %v556_v3 }
 0x693   :  { %v550_v4 = vpop.f32.mrf.mxu3 }
 0x694   :  { %v554_v5 = vmul.f32 0.25, %v550_v4  ;;  %v2006_v4 = vld [vmem:[%s2734_s2 + $0x130] ss:$0 sm:$0xff] }
 0x695   :  { %v655_v6 = vpop.f32.mrf.mxu0 }
 0x696   :  { %v686_v8 = vmul.f32 0.25, %v655_v6  ;;  %v559_v9 = vsel %vm555_vm6, %v554_v5, -inf }
 0x697   :  { %560 = vmax.xlane.f32.xlu0 %v559_v9 }
 0x698   :  { %v683_v10 = vpop.f32.mrf.mxu2  ;;  %v688_v11 = vsel %vm555_vm6, %v686_v8, -inf }
 0x699   :  { %v687_v12 = vmul.f32 0.25, %v683_v10  ;;  %689 = vmax.xlane.f32.xlu2 %v688_v11 }
 0x69b   :  { %v691_v13 = vsel %vm555_vm6, %v687_v12, -inf }
 0x69c   :  { %692 = vmax.xlane.f32.xlu1 %v691_v13 }
 0x6e4   :  { %v558_v14 = vpop.xlane.xlu1 %557 }
 0x6e5   :  { %v562_v15 = vsub.f32 %v553_v2, %v558_v14 }
 0x6e7   :  { %v564_v16 = vmul.f32 1.442695, %v562_v15 }
 0x6e9   :  { %2049 = vpow2.f32 %v564_v16 }
 0x6ef   :  { %v2050_v17 = vpop.eup %2049 }
 0x6f0   :  { %v568_v18 = vsel %vm555_vm6, %v2050_v17, 0.0 }
 0x6f1   :  { %569 = vadd.xlane.f32.xlu0 %v568_v18 }
 0x705   :  { %1982 = vrot.lane.b32.xlu0 %v1981_v19, %s2161_s28 }
 0x70a   :  { %v561_v20 = vpop.xlane.xlu0 %560 }
 0x70b   :  { %v563_v21 = vsub.f32 %v554_v5, %v561_v20 }
 0x70c   :  { %v690_v22 = vpop.xlane.xlu2 %689 }
 0x70d   :  { %v566_v23 = vmul.f32 1.442695, %v563_v21  ;;  %v694_v24 = vsub.f32 %v686_v8, %v690_v22  ;;  %v866_v22 = vld [vmem:[%s2734_s2 + $0x160] sm:$0xff] }
 0x70e   :  { %887 = vmatpush.msra.mxu2 %v866_v22 }
 0x70f   :  { %2051 = vpow2.f32 %v566_v23  ;;  %v696_v25 = vmul.f32 1.442695, %v694_v24  ;;  %v693_v26 = vpop.xlane.xlu1 %692  ;;  %v865_v23 = vld [vmem:[%s2734_s2 + $0x158] sm:$0xff]  ;;  %v864_v24 = vld [vmem:[%s2734_s2 + $0x150] sm:$0xff] }
 0x710   :  { %v695_v27 = vsub.f32 %v687_v12, %v693_v26  ;;  %888 = vmatpush.msra.mxu2 %v865_v23 }
 0x711   :  { %2053 = vpow2.f32 %v696_v25  ;;  %v863_v25 = vld [vmem:[%s2734_s2 + $0x148] sm:$0xff] }
 0x712   :  { %v698_v28 = vmul.f32 1.442695, %v695_v27  ;;  %889 = vmatpush.msra.mxu2 %v864_v24 }
 0x714   :  { %2055 = vpow2.f32 %v698_v28  ;;  %890 = vmatpush.msra.mxu2 %v863_v25 }
 0x715   :  { %v2052_v29 = vpop.eup %2051 }
 0x716   :  { %v571_v30 = vsel %vm555_vm6, %v2052_v29, 0.0 }
 0x717   :  { %v2054_v31 = vpop.eup %2053  ;;  %572 = vadd.xlane.f32.xlu2 %v571_v30 }
 0x718   :  { %v700_v32 = vsel %vm555_vm6, %v2054_v31, 0.0 }
 0x719   :  { %701 = vadd.xlane.f32.xlu1 %v700_v32 }
 0x71a   :  { %v2056_v33 = vpop.eup %2055 }
 0x71b   :  { %v703_v34 = vsel %vm555_vm6, %v2056_v33, 0.0 }
 0x71f   :  { %704 = vadd.xlane.f32.xlu2 %v703_v34 }
 0x732   :  { %1987 = vrot.lane.b32.xlu1 %v1981_v19, %s2162_s29 }
 0x764   :  { %v570_v35 = vpop.xlane.xlu0 %569 }
 0x765   :  { %2057 = vrcp.f32 %v570_v35  ;;  %v2007_v35 = vld [vmem:[%s2734_s2 + $0x138] ss:$0 sm:$0xff] }
 0x76b   :  { %v2058_v36 = vpop.eup %2057 }
 0x76c   :  { %v576_v40 = vmul.f32 %v2058_v36, %v2050_v17 }
 0x777   :  { %v1983_v37 = vpop.permute.xlu0 %1982 }
 0x778   :  { %v1985_v38 = vunpack.i.h.bf16 %v1983_v37  ;;  %v1984_v39 = vunpack.i.l.bf16 %v1983_v37 }
 0x77a   :  { %599 = vmatpush.msra.mxu1 %v1984_v39  ;;  %625 = vmatpush.msra.mxu3 %v1985_v38  ;;  %v2008_v38 = vld [vmem:[%s2734_s2 + $0x140] ss:$0 sm:$0xff] }
 0x77b   :  { %1920 = vmatmul.msk.f32.vlgmr.msra.gmra.mxu1 %vm555_vm6, %v576_v40 }
 0x78a   :  { %v573_v41 = vpop.xlane.xlu2 %572 }
 0x78b   :  { %2059 = vrcp.f32 %v573_v41 }
 0x78c   :  { %v702_v44 = vpop.xlane.xlu1 %701 }
 0x78d   :  { %2061 = vrcp.f32 %v702_v44 }
 0x791   :  { %v2060_v42 = vpop.eup %2059 }
 0x792   :  { %v577_v43 = vmul.f32 %v2060_v42, %v2052_v29  ;;  %v705_v45 = vpop.xlane.xlu2 %704 }
 0x793   :  { %2063 = vrcp.f32 %v705_v45  ;;  %v2062_v47 = vpop.eup %2061 }
 0x794   :  { %1921 = vmatmul.msk.f32.vlgmr.msra.gmra.mxu3 %vm555_vm6, %v577_v43  ;;  %v708_v52 = vmul.f32 %v2062_v47, %v2054_v31 }
 0x799   :  { %v2064_v48 = vpop.eup %2063 }
 0x79a   :  { %v709_v53 = vmul.f32 %v2064_v48, %v2056_v33 }
 0x7a4   :  { %v1988_v49 = vpop.permute.xlu1 %1987 }
 0x7a5   :  { %v1990_v50 = vunpack.i.h.bf16 %v1988_v49  ;;  %v1989_v51 = vunpack.i.l.bf16 %v1988_v49 }
 0x7a7   :  { %731 = vmatpush.msrb.mxu1 %v1989_v51  ;;  %757 = vmatpush.msrb.mxu3 %v1990_v50 }
 0x7a8   :  { %1926 = vmatmul.msk.f32.vlgmr.msrb.gmra.mxu1 %vm555_vm6, %v708_v52  ;;  %1927 = vmatmul.msk.f32.vlgmr.msrb.gmra.mxu3 %vm555_vm6, %v709_v53 }
 0x7a9   :  { %960 = vmatpush.msra.mxu1 %v941_v55 }
 0x7ab   :  { %961 = vmatpush.msra.mxu1 %v940_v56 }
 0x7f8   :  { %v601_v57 = vpop.f32.mrf.mxu1 }
 0x817   :  { %v627_v58 = vpop.f32.mrf.mxu3 }
 0x825   :  { %v733_v59 = vpop.f32.mrf.mxu1 }
 0x826   :  { %764 = vrot.lane.b32.xlu2 %v733_v59, %s2163_s9 }
 0x82b   :  { %v759_v61 = vpop.f32.mrf.mxu3 }
 0x82c   :  { %766 = vrot.lane.b32.xlu0 %v759_v61, %s2163_s9  ;;  %v938_v61 = vld [vmem:[%s2734_s2 + $0x170] sm:$0xff] }
 0x880   :  { %v765_v63 = vpop.permute.xlu2 %764 }
 0x881   :  { %v770_v1 = vsel %vm134_vm10, %v601_v57, %v765_v63  ;;  %v2009_v57 = vld [vmem:[%s2734_s2 + $0x168] ss:$0 sm:$0xff] }
 0x882   :  { %1928 = vmatmul.msk.f32.vlgmr.msrb.gmra.mxu0 %vm247_vm1, %v770_v1 }
 0x89e   :  { %v767_v2 = vpop.permute.xlu0 %766 }
 0x89f   :  { %v771_v3 = vsel %vm134_vm10, %v627_v58, %v767_v2  ;;  %v939_v58 = vld [vmem:[%s2734_s2 + $0x178] sm:$0xff] }
 0x8a0   :  { %1929 = vmatmul.msk.f32.gmra.mxu0 %vm247_vm1, %v771_v3  ;;  %962 = vmatpush.msra.mxu1 %v939_v58 }
 0x8a2   :  { %963 = vmatpush.msra.mxu1 %v938_v61 }
 0x8ff   :  { %v799_v5 = vpop.f32.mrf.mxu0 }
 0x900   :  { %v805_v6 = vadd.f32 %v799_v5, %v2288_v0 }
 0x902   :  { %v2383_v8 = vadd.f32 %v2006_v4, %v805_v6 }
 0x904   :  { %v813_v9 = vsel %vm247_vm1, %v2383_v8, 0.0 }
 0x905   :  { %814 = vadd.xlane.f32.xlu0 %v813_v9 }
 0x91d   :  { %v802_v10 = vpop.f32.mrf.mxu0 }
 0x91e   :  { %v806_v11 = vadd.f32 %v802_v10, %v2298_v7 }
 0x920   :  { %v2388_v12 = vadd.f32 %v2006_v4, %v806_v11 }
 0x922   :  { %v816_v13 = vsel %vm247_vm1, %v2388_v12, 0.0 }
 0x923   :  { %817 = vadd.xlane.f32.xlu1 %v816_v13 }
 0x978   :  { %v815_v14 = vpop.xlane.xlu0 %814 }
 0x979   :  { %v819_v15 = vmul.f32 %v815_v14, %v2248_v46 }
 0x97b   :  { %v821_v0 = vsub.f32 %v2383_v8, %v819_v15 }
 0x97d   :  { %v823_v16 = vmul.f32 %v821_v0, %v821_v0 }
 0x97f   :  { %v825_v17 = vsel %vm247_vm1, %v823_v16, 0.0 }
 0x980   :  { %826 = vadd.xlane.f32.xlu2 %v825_v17 }
 0x996   :  { %v818_v18 = vpop.xlane.xlu1 %817 }
 0x997   :  { %v820_v19 = vmul.f32 %v818_v18, %v2248_v46 }
 0x999   :  { %v822_v7 = vsub.f32 %v2388_v12, %v820_v19 }
 0x99b   :  { %v824_v20 = vmul.f32 %v822_v7, %v822_v7 }
 0x99d   :  { %v828_v21 = vsel %vm247_vm1, %v824_v20, 0.0 }
 0x99e   :  { %829 = vadd.xlane.f32.xlu0 %v828_v21 }
 0x9f3   :  { %v827_v26 = vpop.xlane.xlu2 %826 }
 0x9f4   :  { %v831_v27 = vmul.f32 %v827_v26, %v2248_v46 }
 0x9f6   :  { %v833_v28 = vadd.f32 1e-05, %v831_v27 }
 0x9f8   :  { %2065 = vrsqrt.f32 %v833_v28  ;;  %vm841_vm8 = vweird.f32 %v833_v28 }
 0x9fe   :  { %v2066_v29 = vpop.eup %2065 }
 0x9ff   :  { %v836_v30 = vmul.f32 %v2066_v29, %v833_v28  ;;  %vm842_vm7 = vweird.f32 %v2066_v29 }
 0xa00   :  { %vm843_vm9 = vmor %vm841_vm8, %vm842_vm7 }
 0xa01   :  { %v837_v31 = vmul.f32 %v2066_v29, %v836_v30 }
 0xa03   :  { %v838_v32 = vmul.f32 0.5, %v837_v31  ;;  %v2010_v31 = vld [vmem:[%s2734_s2 + $0x190] ss:$0 sm:$0xff] }
 0xa05   :  { %v839_v33 = vsub.f32 1.5, %v838_v32 }
 0xa07   :  { %v840_v34 = vmul.f32 %v2066_v29, %v839_v33 }
 0xa09   :  { %v844_v36 = vsel %vm843_vm9, %v2066_v29, %v840_v34 }
 0xa0a   :  { %v855_v37 = vmul.f32 %v844_v36, %v821_v0 }
 0xa0c   :  { %v858_v39 = vmul.f32 %v2007_v35, %v855_v37 }
 0xa0e   :  { %v861_v40 = vadd.f32 %v2008_v38, %v858_v39 }
 0xa10   :  { %1930 = vmatmul.msk.f32.vlgmr.msra.gmra.mxu2 %vm247_vm1, %v861_v40 }
 0xa11   :  { %v830_v41 = vpop.xlane.xlu0 %829 }
 0xa12   :  { %v832_v42 = vmul.f32 %v830_v41, %v2248_v46 }
 0xa14   :  { %v834_v43 = vadd.f32 1e-05, %v832_v42 }
 0xa16   :  { %2067 = vrsqrt.f32 %v834_v43  ;;  %vm851_vm12 = vweird.f32 %v834_v43 }
 0xa1c   :  { %v2068_v44 = vpop.eup %2067 }
 0xa1d   :  { %v846_v45 = vmul.f32 %v2068_v44, %v834_v43  ;;  %vm852_vm11 = vweird.f32 %v2068_v44 }
 0xa1e   :  { %vm853_vm13 = vmor %vm851_vm12, %vm852_vm11 }
 0xa1f   :  { %v847_v47 = vmul.f32 %v2068_v44, %v846_v45 }
 0xa21   :  { %v848_v48 = vmul.f32 0.5, %v847_v47 }
 0xa23   :  { %v849_v49 = vsub.f32 1.5, %v848_v48 }
 0xa25   :  { %v850_v50 = vmul.f32 %v2068_v44, %v849_v49  ;;  %v1032_v49 = vld [vmem:[%s2734_s2 + $0x1c0] sm:$0xff] }
 0xa26   :  { %1053 = vmatpush.msra.mxu3 %v1032_v49 }
 0xa27   :  { %v854_v51 = vsel %vm853_vm13, %v2068_v44, %v850_v50  ;;  %v1031_v50 = vld [vmem:[%s2734_s2 + $0x1b8] sm:$0xff] }
 0xa28   :  { %v856_v52 = vmul.f32 %v854_v51, %v822_v7  ;;  %1054 = vmatpush.msra.mxu3 %v1031_v50  ;;  %v1030_v51 = vld [vmem:[%s2734_s2 + $0x1b0] sm:$0xff] }
 0xa2a   :  { %v859_v53 = vmul.f32 %v2007_v35, %v856_v52  ;;  %v1029_v52 = vld [vmem:[%s2734_s2 + $0x1a8] sm:$0xff]  ;;  %1055 = vmatpush.msra.mxu3 %v1030_v51 }
 0xa2c   :  { %v862_v54 = vadd.f32 %v2008_v38, %v859_v53  ;;  %1056 = vmatpush.msra.mxu3 %v1029_v52 }
 0xa2e   :  { %1931 = vmatmul.msk.f32.gmra.mxu2 %vm247_vm1, %v862_v54 }
 0xa93   :  { %v892_v59 = vpop.f32.mrf.mxu2 }
 0xa94   :  { %v893_v62 = vadd.f32 %v2009_v57, %v892_v59 }
 0xa96   :  { %v1932_v63 = vmul.f32 -1.442695, %v893_v62 }
 0xa98   :  { %2069 = vpow2.f32 %v1932_v63  ;;  %v2011_v63 = vld [vmem:[%s2734_s2 + $0x198] ss:$0 sm:$0xff] }
 0xa9e   :  { %v2070_v1 = vpop.eup %2069 }
 0xa9f   :  { %v904_v2 = vadd.f32 1.0, %v2070_v1 }
 0xaa1   :  { %2071 = vrcp.f32 %v904_v2  ;;  %v917_v6 = vand.u32 2147483648, %v904_v2  ;;  %v915_v10 = vand.u32 2147483647, %v904_v2  ;;  %vm911_vm15 = vweird.f32 %v904_v2 }
 0xaa3   :  { %v918_v13 = vor.u32 1.1754944e-38, %v917_v6  ;;  %vm916_vm2 = vcmp.eq.f32.partialorder %v915_v10, 8.507059e+37 }
 0xaa7   :  { %v2072_v3 = vpop.eup %2071 }
 0xaa8   :  { %v907_v4 = vmul.f32 %v2072_v3, %v904_v2  ;;  %vm912_vm14 = vweird.f32 %v2072_v3 }
 0xaa9   :  { %vm913_vm0 = vmor %vm911_vm15, %vm912_vm14 }
 0xaaa   :  { %v908_v5 = vsub.f32 1.0, %v907_v4 }
 0xaac   :  { %v909_v9 = vmul.f32 %v2072_v3, %v908_v5 }
 0xaae   :  { %v910_v11 = vadd.f32 %v2072_v3, %v909_v9 }
 0xab0   :  { %v914_v14 = vsel %vm913_vm0, %v2072_v3, %v910_v11  ;;  %v2012_v3 = vld [vmem:[%s2734_s2 + $0x1a0] ss:$0 sm:$0xff] }
 0xab1   :  { %v919_v15 = vsel %vm916_vm2, %v918_v13, %v914_v14  ;;  %v895_v0 = vpop.f32.mrf.mxu2 }
 0xab2   :  { %v936_v16 = vmul.f32 %v919_v15, %v893_v62  ;;  %v896_v17 = vadd.f32 %v2009_v57, %v895_v0 }
 0xab4   :  { %v1933_v18 = vmul.f32 -1.442695, %v896_v17  ;;  %1934 = vmatmul.msk.f32.vlgmr.msra.gmra.mxu1 %vm247_vm1, %v936_v16 }
 0xab6   :  { %2073 = vpow2.f32 %v1933_v18 }
 0xabc   :  { %v2074_v19 = vpop.eup %2073 }
 0xabd   :  { %v905_v7 = vadd.f32 1.0, %v2074_v19 }
 0xabf   :  { %2075 = vrcp.f32 %v905_v7  ;;  %v932_v23 = vand.u32 2147483648, %v905_v7  ;;  %v930_v25 = vand.u32 2147483647, %v905_v7  ;;  %vm926_vm4 = vweird.f32 %v905_v7 }
 0xac1   :  { %v933_v27 = vor.u32 1.1754944e-38, %v932_v23  ;;  %vm931_vm7 = vcmp.eq.f32.partialorder %v930_v25, 8.507059e+37 }
 0xac5   :  { %v2076_v20 = vpop.eup %2075 }
 0xac6   :  { %v922_v21 = vmul.f32 %v2076_v20, %v905_v7  ;;  %vm927_vm3 = vweird.f32 %v2076_v20 }
 0xac7   :  { %vm928_vm5 = vmor %vm926_vm4, %vm927_vm3 }
 0xac8   :  { %v923_v22 = vsub.f32 1.0, %v922_v21 }
 0xaca   :  { %v924_v24 = vmul.f32 %v2076_v20, %v923_v22 }
 0xacc   :  { %v925_v26 = vadd.f32 %v2076_v20, %v924_v24 }
 0xace   :  { %v929_v28 = vsel %vm928_vm5, %v2076_v20, %v925_v26  ;;  %v2013_v20 = vld [vmem:[%s2734_s2 + $0x1c8] ss:$0 sm:$0xff] }
 0xacf   :  { %v934_v29 = vsel %vm931_vm7, %v933_v27, %v929_v28 }
 0xad0   :  { %v937_v30 = vmul.f32 %v934_v29, %v896_v17 }
 0xad2   :  { %1935 = vmatmul.msk.f32.gmra.mxu1 %vm247_vm1, %v937_v30 }
 0xb31   :  { %v965_v32 = vpop.f32.mrf.mxu1 }
 0xb32   :  { %v971_v33 = vadd.f32 %v965_v32, %v2383_v8 }
 0xb34   :  { %v2441_v34 = vadd.f32 %v2010_v31, %v971_v33 }
 0xb36   :  { %v979_v35 = vsel %vm247_vm1, %v2441_v34, 0.0 }
 0xb37   :  { %980 = vadd.xlane.f32.xlu1 %v979_v35 }
 0xb4f   :  { %v968_v36 = vpop.f32.mrf.mxu1 }
 0xb50   :  { %v972_v37 = vadd.f32 %v968_v36, %v2388_v12 }
 0xb52   :  { %v2446_v38 = vadd.f32 %v2010_v31, %v972_v37 }
 0xb54   :  { %v982_v39 = vsel %vm247_vm1, %v2446_v38, 0.0 }
 0xb55   :  { %983 = vadd.xlane.f32.xlu2 %v982_v39 }
 0xbaa   :  { %v981_v40 = vpop.xlane.xlu1 %980 }
 0xbab   :  { %v985_v41 = vmul.f32 %v981_v40, %v2248_v46 }
 0xbad   :  { %v987_v8 = vsub.f32 %v2441_v34, %v985_v41 }
 0xbaf   :  { %v989_v42 = vmul.f32 %v987_v8, %v987_v8 }
 0xbb1   :  { %v991_v43 = vsel %vm247_vm1, %v989_v42, 0.0 }
 0xbb2   :  { %992 = vadd.xlane.f32.xlu0 %v991_v43 }
 0xbc8   :  { %v984_v44 = vpop.xlane.xlu2 %983 }
 0xbc9   :  { %v986_v45 = vmul.f32 %v984_v44, %v2248_v46 }
 0xbcb   :  { %v988_v12 = vsub.f32 %v2446_v38, %v986_v45 }
 0xbcd   :  { %v990_v47 = vmul.f32 %v988_v12, %v988_v12 }
 0xbcf   :  { %v994_v48 = vsel %vm247_vm1, %v990_v47, 0.0 }
 0xbd0   :  { %995 = vadd.xlane.f32.xlu1 %v994_v48 }
 0xc25   :  { %v993_v53 = vpop.xlane.xlu0 %992 }
 0xc26   :  { %v997_v54 = vmul.f32 %v993_v53, %v2248_v46 }
 0xc28   :  { %v999_v55 = vadd.f32 1e-05, %v997_v54 }
 0xc2a   :  { %2077 = vrsqrt.f32 %v999_v55  ;;  %vm1007_vm9 = vweird.f32 %v999_v55 }
 0xc30   :  { %v2078_v56 = vpop.eup %2077 }
 0xc31   :  { %v1002_v57 = vmul.f32 %v2078_v56, %v999_v55  ;;  %vm1008_vm8 = vweird.f32 %v2078_v56 }
 0xc32   :  { %vm1009_vm11 = vmor %vm1007_vm9, %vm1008_vm8 }
 0xc33   :  { %v1003_v58 = vmul.f32 %v2078_v56, %v1002_v57 }
 0xc35   :  { %v1004_v59 = vmul.f32 0.5, %v1003_v58 }
 0xc37   :  { %v1005_v61 = vsub.f32 1.5, %v1004_v59 }
 0xc39   :  { %v1006_v62 = vmul.f32 %v2078_v56, %v1005_v61 }
 0xc3b   :  { %v1010_v1 = vsel %vm1009_vm11, %v2078_v56, %v1006_v62 }
 0xc3c   :  { %v1021_v2 = vmul.f32 %v1010_v1, %v987_v8 }
 0xc3e   :  { %v1024_v4 = vmul.f32 %v2011_v63, %v1021_v2 }
 0xc40   :  { %v1027_v5 = vadd.f32 %v2012_v3, %v1024_v4 }
 0xc42   :  { %1936 = vmatmul.msk.f32.vlgmr.msra.gmra.mxu3 %vm247_vm1, %v1027_v5 }
 0xc43   :  { %v996_v6 = vpop.xlane.xlu1 %995 }
 0xc44   :  { %v998_v9 = vmul.f32 %v996_v6, %v2248_v46 }
 0xc46   :  { %v1000_v10 = vadd.f32 1e-05, %v998_v9 }
 0xc48   :  { %2079 = vrsqrt.f32 %v1000_v10  ;;  %vm1017_vm13 = vweird.f32 %v1000_v10 }
 0xc4e   :  { %v2080_v11 = vpop.eup %2079 }
 0xc4f   :  { %v1012_v13 = vmul.f32 %v2080_v11, %v1000_v10  ;;  %vm1018_vm12 = vweird.f32 %v2080_v11 }
 0xc50   :  { %vm1019_vm14 = vmor %vm1017_vm13, %vm1018_vm12 }
 0xc51   :  { %v1013_v14 = vmul.f32 %v2080_v11, %v1012_v13 }
 0xc53   :  { %v1014_v15 = vmul.f32 0.5, %v1013_v14 }
 0xc55   :  { %v1015_v0 = vsub.f32 1.5, %v1014_v15 }
 0xc57   :  { %v1016_v16 = vmul.f32 %v2080_v11, %v1015_v0 }
 0xc59   :  { %v1020_v17 = vsel %vm1019_vm14, %v2080_v11, %v1016_v16 }
 0xc5a   :  { %v1022_v18 = vmul.f32 %v1020_v17, %v988_v12 }
 0xc5c   :  { %v1025_v19 = vmul.f32 %v2011_v63, %v1022_v18 }
 0xc5e   :  { %v1028_v7 = vadd.f32 %v2012_v3, %v1025_v19 }
 0xc60   :  { %1937 = vmatmul.msk.f32.gmra.mxu3 %vm247_vm1, %v1028_v7 }
 0xcc5   :  { %v1058_v21 = vpop.f32.mrf.mxu3 }
 0xcc6   :  { %v1059_v22 = vadd.f32 %v2013_v20, %v1058_v21 }
 0xcc8   :  { %1065 = vrot.lane.b32.xlu0 %v1059_v22, %s2158_s25 }
 0xce3   :  { %v1061_v23 = vpop.f32.mrf.mxu3 }
 0xce4   :  { %v1062_v24 = vadd.f32 %v2013_v20, %v1061_v23 }
 0xce6   :  { %1222 = vrot.lane.b32.xlu0 %v1062_v24, %s2160_s27  ;;  %1224 = vrot.lane.b32.xlu1 %v1062_v24, %s2159_s26  ;;  %v1991_v55 = vpack.i.bf16 %v1062_v24, %v1059_v22 }
 0xce7   :  { %1092 = vrot.lane.b32.xlu2 %v1062_v24, %s2158_s25 }
 0xcee   :  { %1194 = vrot.lane.b32.xlu1 %v1059_v22, %s2160_s27 }
 0xcef   :  { %1196 = vrot.lane.b32.xlu2 %v1059_v22, %s2159_s26 }
 0xd3a   :  { %v1066_v25 = vpop.permute.xlu0 %1065 }
 0xd3b   :  { %1938 = vmatpush.xpose.msk.msra.mxu0 %vm134_vm10, %v1066_v25 }
 0xd3e   :  { %1939 = vmatmul.msk.f32.vlgmr.msra.gmra.mxu0 %vm134_vm10, %v1059_v22 }
 0xd41   :  { %v1093_v26 = vpop.permute.xlu2 %1092 }
 0xd42   :  { %1940 = vmatpush.xpose.msk.msrb.mxu2 %vm134_vm10, %v1093_v26  ;;  %v1339_v26 = vld [vmem:[%s2734_s2 + $0x1e8] sm:$0xff] }
 0xd45   :  { %1941 = vmatmul.msk.f32.vlgmr.msrb.gmra.mxu2 %vm134_vm10, %v1062_v24 }
 0xd49   :  { %v1197_v27 = vpop.permute.xlu2 %1196 }
 0xd4a   :  { %1944 = vmatpush.xpose.msk.msrb.mxu0 %vm134_vm10, %v1197_v27  ;;  %v1338_v27 = vld [vmem:[%s2734_s2 + $0x1e0] sm:$0xff] }
 0xd4e   :  { %1358 = vmatpush.msra.mxu0 %v1339_v26  ;;  %v1503_v26 = vld [vmem:[%s2734_s2 + $0x238] sm:$0xff] }
 0xd50   :  { %1359 = vmatpush.msra.mxu0 %v1338_v27 }
 0xd58   :  { %v1225_v28 = vpop.permute.xlu1 %1224  ;;  %v1223_v29 = vpop.permute.xlu0 %1222 }
 0xd59   :  { %1946 = vmatpush.xpose.msk.msra.mxu2 %vm134_vm10, %v1225_v28  ;;  %v1337_v28 = vld [vmem:[%s2734_s2 + $0x1d8] sm:$0xff] }
 0xd5a   :  { %1360 = vmatpush.msra.mxu0 %v1337_v28  ;;  %v1502_v28 = vld [vmem:[%s2734_s2 + $0x230] sm:$0xff] }
 0xd5c   :  { %1947 = vmatmul.msk.f32.vlgmr.msra.gmra.mxu2 %vm134_vm10, %v1223_v29  ;;  %v1336_v29 = vld [vmem:[%s2734_s2 + $0x1d0] sm:$0xff] }
 0xd5d   :  { %1361 = vmatpush.msra.mxu0 %v1336_v29 }
 0xd60   :  { %v1195_v30 = vpop.permute.xlu1 %1194 }
 0xd61   :  { %1945 = vmatmul.msk.f32.vlgmr.msrb.gmra.mxu0 %vm134_vm10, %v1195_v30 }
 0xdbb   :  { %v1088_v31 = vpop.f32.mrf.mxu0 }
 0xdbc   :  { %v1118_v32 = vmul.f32 0.25, %v1088_v31 }
 0xdbe   :  { %v1120_v33 = vsel %vm555_vm6, %v1118_v32, -inf }
 0xdbf   :  { %1121 = vmax.xlane.f32.xlu0 %v1120_v33 }
 0xdc8   :  { %v1115_v35 = vpop.f32.mrf.mxu2 }
 0xdc9   :  { %v1119_v36 = vmul.f32 0.25, %v1115_v35  ;;  %v2014_v35 = vld [vmem:[%s2734_s2 + $0x1f0] ss:$0 sm:$0xff] }
 0xdcb   :  { %v1123_v37 = vsel %vm555_vm6, %v1119_v36, -inf }
 0xdcc   :  { %1124 = vmax.xlane.f32.xlu2 %v1123_v37 }
 0xdde   :  { %v1219_v39 = vpop.f32.mrf.mxu0 }
 0xddf   :  { %v1250_v40 = vmul.f32 0.25, %v1219_v39  ;;  %v1247_v41 = vpop.f32.mrf.mxu2 }
 0xde0   :  { %v1251_v8 = vmul.f32 0.25, %v1247_v41 }
 0xde1   :  { %v1252_v42 = vsel %vm555_vm6, %v1250_v40, -inf }
 0xde2   :  { %1253 = vmax.xlane.f32.xlu1 %v1252_v42  ;;  %v1255_v43 = vsel %vm555_vm6, %v1251_v8, -inf }
 0xde3   :  { %1256 = vmax.xlane.f32.xlu0 %v1255_v43 }
 0xe32   :  { %v1122_v44 = vpop.xlane.xlu0 %1121 }
 0xe33   :  { %v1126_v45 = vsub.f32 %v1118_v32, %v1122_v44 }
 0xe35   :  { %v1128_v12 = vmul.f32 1.442695, %v1126_v45 }
 0xe37   :  { %2081 = vpow2.f32 %v1128_v12 }
 0xe3d   :  { %v2082_v47 = vpop.eup %2081 }
 0xe3e   :  { %v1132_v48 = vsel %vm555_vm6, %v2082_v47, 0.0 }
 0xe3f   :  { %v1125_v49 = vpop.xlane.xlu2 %1124  ;;  %1133 = vadd.xlane.f32.xlu2 %v1132_v48 }
 0xe40   :  { %v1127_v50 = vsub.f32 %v1119_v36, %v1125_v49 }
 0xe42   :  { %v1130_v51 = vmul.f32 1.442695, %v1127_v50 }
 0xe44   :  { %2083 = vpow2.f32 %v1130_v51 }
 0xe4a   :  { %v2084_v52 = vpop.eup %2083 }
 0xe4b   :  { %v1135_v53 = vsel %vm555_vm6, %v2084_v52, 0.0 }
 0xe4c   :  { %1136 = vadd.xlane.f32.xlu1 %v1135_v53  ;;  %v1429_v53 = vld [vmem:[%s2734_s2 + $0x218] sm:$0xff] }
 0xe55   :  { %v1254_v54 = vpop.xlane.xlu1 %1253 }
 0xe56   :  { %v1258_v56 = vsub.f32 %v1250_v40, %v1254_v54  ;;  %v1257_v57 = vpop.xlane.xlu0 %1256  ;;  %v1428_v54 = vld [vmem:[%s2734_s2 + $0x210] sm:$0xff] }
 0xe57   :  { %v1259_v58 = vsub.f32 %v1251_v8, %v1257_v57  ;;  %1992 = vrot.lane.b32.xlu2 %v1991_v55, %s2161_s28 }
 0xe58   :  { %v1260_v59 = vmul.f32 1.442695, %v1258_v56 }
 0xe59   :  { %v1262_v61 = vmul.f32 1.442695, %v1259_v58 }
 0xe5a   :  { %2085 = vpow2.f32 %v1260_v59 }
 0xe5b   :  { %2087 = vpow2.f32 %v1262_v61 }
 0xe60   :  { %v2086_v62 = vpop.eup %2085 }
 0xe61   :  { %v2088_v63 = vpop.eup %2087  ;;  %v1264_v1 = vsel %vm555_vm6, %v2086_v62, 0.0 }
 0xe62   :  { %1265 = vadd.xlane.f32.xlu0 %v1264_v1  ;;  %v1267_v2 = vsel %vm555_vm6, %v2088_v63, 0.0 }
 0xe63   :  { %1268 = vadd.xlane.f32.xlu1 %v1267_v2 }
 0xe76   :  { %1997 = vrot.lane.b32.xlu0 %v1991_v55, %s2162_s29  ;;  %v1427_v55 = vld [vmem:[%s2734_s2 + $0x208] sm:$0xff] }
 0xeb2   :  { %v1134_v3 = vpop.xlane.xlu2 %1133 }
 0xeb3   :  { %2089 = vrcp.f32 %v1134_v3 }
 0xeb9   :  { %v2090_v4 = vpop.eup %2089 }
 0xeba   :  { %v1993_v5 = vpop.permute.xlu2 %1992  ;;  %v1140_v10 = vmul.f32 %v2090_v4, %v2082_v47 }
 0xebb   :  { %v1995_v6 = vunpack.i.h.bf16 %v1993_v5  ;;  %v1994_v9 = vunpack.i.l.bf16 %v1993_v5 }
 0xebd   :  { %1163 = vmatpush.msrb.mxu1 %v1994_v9  ;;  %1189 = vmatpush.msrb.mxu3 %v1995_v6 }
 0xebe   :  { %1942 = vmatmul.msk.f32.vlgmr.msrb.gmra.mxu1 %vm555_vm6, %v1140_v10  ;;  %v2015_v10 = vld [vmem:[%s2734_s2 + $0x1f8] ss:$0 sm:$0xff] }
 0xebf   :  { %v1137_v11 = vpop.xlane.xlu1 %1136 }
 0xec0   :  { %2091 = vrcp.f32 %v1137_v11 }
 0xec6   :  { %v2092_v13 = vpop.eup %2091 }
 0xec7   :  { %v1141_v14 = vmul.f32 %v2092_v13, %v2084_v52  ;;  %v1430_v52 = vld [vmem:[%s2734_s2 + $0x220] sm:$0xff] }
 0xec8   :  { %1451 = vmatpush.msrb.mxu2 %v1430_v52 }
 0xec9   :  { %1943 = vmatmul.msk.f32.vlgmr.msrb.gmra.mxu3 %vm555_vm6, %v1141_v14 }
 0xeca   :  { %1452 = vmatpush.msrb.mxu2 %v1429_v53 }
 0xecc   :  { %1453 = vmatpush.msrb.mxu2 %v1428_v54 }
 0xece   :  { %1454 = vmatpush.msrb.mxu2 %v1427_v55 }
 0xed5   :  { %v1266_v15 = vpop.xlane.xlu0 %1265 }
 0xed6   :  { %v1269_v0 = vpop.xlane.xlu1 %1268  ;;  %2093 = vrcp.f32 %v1266_v15  ;;  %v2016_v15 = vld [vmem:[%s2734_s2 + $0x200] ss:$0 sm:$0xff] }
 0xed7   :  { %2095 = vrcp.f32 %v1269_v0 }
 0xedc   :  { %v2094_v16 = vpop.eup %2093 }
 0xedd   :  { %v2096_v17 = vpop.eup %2095  ;;  %v1272_v20 = vmul.f32 %v2094_v16, %v2086_v62 }
 0xede   :  { %v1273_v21 = vmul.f32 %v2096_v17, %v2088_v63 }
 0xee8   :  { %v1998_v18 = vpop.permute.xlu0 %1997 }
 0xee9   :  { %v2000_v19 = vunpack.i.h.bf16 %v1998_v18  ;;  %v1999_v7 = vunpack.i.l.bf16 %v1998_v18 }
 0xeeb   :  { %1295 = vmatpush.msra.mxu1 %v1999_v7  ;;  %1321 = vmatpush.msra.mxu3 %v2000_v19 }
 0xeec   :  { %1948 = vmatmul.msk.f32.vlgmr.msra.gmra.mxu1 %vm555_vm6, %v1272_v20  ;;  %1949 = vmatmul.msk.f32.vlgmr.msra.gmra.mxu3 %vm555_vm6, %v1273_v21 }
 0xf3b   :  { %v1165_v22 = vpop.f32.mrf.mxu1 }
 0xf4c   :  { %v1191_v23 = vpop.f32.mrf.mxu3 }
 0xf69   :  { %v1297_v24 = vpop.f32.mrf.mxu1 }
 0xf6a   :  { %1328 = vrot.lane.b32.xlu1 %v1297_v24, %s2163_s9  ;;  %v1504_v24 = vld [vmem:[%s2734_s2 + $0x240] sm:$0xff] }
 0xf6f   :  { %v1323_v25 = vpop.f32.mrf.mxu3 }
 0xf70   :  { %1330 = vrot.lane.b32.xlu2 %v1323_v25, %s2163_s9  ;;  %v2017_v25 = vld [vmem:[%s2734_s2 + $0x228] ss:$0 sm:$0xff] }
 0xfca   :  { %v1331_v32 = vpop.permute.xlu2 %1330 }
 0xfcb   :  { %v1335_v33 = vsel %vm134_vm10, %v1191_v23, %v1331_v32  ;;  %v1505_v23 = vld [vmem:[%s2734_s2 + $0x248] sm:$0xff] }
 0xfcc   :  { %1524 = vmatpush.msrb.mxu1 %v1505_v23 }
 0xfce   :  { %1525 = vmatpush.msrb.mxu1 %v1504_v24 }
 0xfd0   :  { %1526 = vmatpush.msrb.mxu1 %v1503_v26 }
 0xfd2   :  { %1527 = vmatpush.msrb.mxu1 %v1502_v28 }
 0xfdc   :  { %v1329_v30 = vpop.permute.xlu1 %1328 }
 0xfdd   :  { %v1334_v31 = vsel %vm134_vm10, %v1165_v22, %v1329_v30 }
 0xfde   :  { %1950 = vmatmul.msk.f32.vlgmr.msra.gmra.mxu0 %vm247_vm1, %v1334_v31 }
 0xfe6   :  { %1951 = vmatmul.msk.f32.gmra.mxu0 %vm247_vm1, %v1335_v33  ;;  %v1544_v33 = vld [vmem:[%s2734_s2 + $0x270] sm:$0xff] }
 0xfe7   :  { %1565 = vmatpush.msrb.mxu3 %v1544_v33 }
0x105b   :  { %v1363_v36 = vpop.f32.mrf.mxu0 }
0x105c   :  { %v1369_v37 = vadd.f32 %v1363_v36, %v2441_v34 }
0x105e   :  { %v2531_v39 = vadd.f32 %v2014_v35, %v1369_v37 }
0x1060   :  { %v1377_v40 = vsel %vm247_vm1, %v2531_v39, 0.0 }
0x1061   :  { %1378 = vadd.xlane.f32.xlu0 %v1377_v40 }
0x1063   :  { %v1366_v41 = vpop.f32.mrf.mxu0 }
0x1064   :  { %v1370_v8 = vadd.f32 %v1366_v41, %v2446_v38 }
0x1066   :  { %v2536_v42 = vadd.f32 %v2014_v35, %v1370_v8 }
0x1068   :  { %v1380_v43 = vsel %vm247_vm1, %v2536_v42, 0.0 }
0x1069   :  { %1381 = vadd.xlane.f32.xlu2 %v1380_v43 }
0x10d4   :  { %v1379_v44 = vpop.xlane.xlu0 %1378 }
0x10d5   :  { %v1383_v45 = vmul.f32 %v1379_v44, %v2248_v46 }
0x10d7   :  { %v1385_v34 = vsub.f32 %v2531_v39, %v1383_v45 }
0x10d9   :  { %v1387_v12 = vmul.f32 %v1385_v34, %v1385_v34 }
0x10db   :  { %v1389_v47 = vsel %vm247_vm1, %v1387_v12, 0.0 }
0x10dc   :  { %1390 = vadd.xlane.f32.xlu1 %v1389_v47  ;;  %v1382_v48 = vpop.xlane.xlu2 %1381 }
0x10dd   :  { %v1384_v49 = vmul.f32 %v1382_v48, %v2248_v46 }
0x10df   :  { %v1386_v38 = vsub.f32 %v2536_v42, %v1384_v49 }
0x10e1   :  { %v1388_v50 = vmul.f32 %v1386_v38, %v1386_v38 }
0x10e3   :  { %v1392_v51 = vsel %vm247_vm1, %v1388_v50, 0.0 }
0x10e4   :  { %1393 = vadd.xlane.f32.xlu0 %v1392_v51 }
0x114f   :  { %v1391_v56 = vpop.xlane.xlu1 %1390 }
0x1150   :  { %v1395_v57 = vmul.f32 %v1391_v56, %v2248_v46 }
0x1152   :  { %v1397_v58 = vadd.f32 1e-05, %v1395_v57 }
0x1154   :  { %2097 = vrsqrt.f32 %v1397_v58  ;;  %vm1405_vm6 = vweird.f32 %v1397_v58 }
0x1157   :  { %v1394_v59 = vpop.xlane.xlu0 %1393 }
0x1158   :  { %v1396_v61 = vmul.f32 %v1394_v59, %v2248_v46 }
0x115a   :  { %v2098_v62 = vpop.eup %2097  ;;  %v1398_v63 = vadd.f32 1e-05, %v1396_v61 }
0x115b   :  { %v1400_v1 = vmul.f32 %v2098_v62, %v1397_v58  ;;  %vm1406_vm10 = vweird.f32 %v2098_v62 }
0x115c   :  { %2099 = vrsqrt.f32 %v1398_v63  ;;  %vm1407_vm15 = vmor %vm1405_vm6, %vm1406_vm10  ;;  %vm1415_vm2 = vweird.f32 %v1398_v63 }
0x115d   :  { %v1401_v2 = vmul.f32 %v2098_v62, %v1400_v1  ;;  %v1542_v1 = vld [vmem:[%s2734_s2 + $0x260] sm:$0xff] }
0x115f   :  { %v1402_v3 = vmul.f32 0.5, %v1401_v2  ;;  %v1541_v2 = vld [vmem:[%s2734_s2 + $0x258] sm:$0xff] }
0x1161   :  { %v1403_v4 = vsub.f32 1.5, %v1402_v3  ;;  %v2018_v3 = vld [vmem:[%s2734_s2 + $0x250] ss:$0 sm:$0xff] }
0x1162   :  { %v2100_v5 = vpop.eup %2099 }
0x1163   :  { %v1404_v6 = vmul.f32 %v2098_v62, %v1403_v4  ;;  %v1410_v9 = vmul.f32 %v2100_v5, %v1398_v63  ;;  %vm1416_vm0 = vweird.f32 %v2100_v5  ;;  %v1543_v63 = vld [vmem:[%s2734_s2 + $0x268] sm:$0xff] }
0x1164   :  { %vm1417_vm3 = vmor %vm1415_vm2, %vm1416_vm0  ;;  %1566 = vmatpush.msrb.mxu3 %v1543_v63  ;;  %vm1626_vm0 = vcmask 523264  }
0x1165   :  { %v1408_v11 = vsel %vm1407_vm15, %v2098_v62, %v1404_v6  ;;  %v1411_v13 = vmul.f32 %v2100_v5, %v1410_v9 }
0x1166   :  { %v1419_v14 = vmul.f32 %v1408_v11, %v1385_v34  ;;  %1567 = vmatpush.msrb.mxu3 %v1542_v1 }
0x1167   :  { %v1412_v0 = vmul.f32 0.5, %v1411_v13  ;;  %v1623_v13 = vld [vmem:[%s2734_s2 + $0x2b8] sm:$0xff] }
0x1168   :  { %v1422_v16 = vmul.f32 %v2015_v10, %v1419_v14  ;;  %1568 = vmatpush.msrb.mxu3 %v1541_v2  ;;  %1641 = vmatpush.msrb.mxu0 %v1623_v13  ;;  %v1622_v14 = vld [vmem:[%s2734_s2 + $0x2b0] sm:$0xff] }
0x1169   :  { %v1413_v17 = vsub.f32 1.5, %v1412_v0  ;;  %v1618_v0 = vld [vmem:[%s2734_s2 + $0x290] sm:$0xff] }
0x116a   :  { %v1425_v18 = vadd.f32 %v2016_v15, %v1422_v16  ;;  %1642 = vmatpush.msrb.mxu0 %v1622_v14  ;;  %v2019_v16 = vld [vmem:[%s2734_s2 + $0x278] ss:$0 sm:$0xff] }
0x116b   :  { %v1414_v19 = vmul.f32 %v2100_v5, %v1413_v17  ;;  %v1617_v17 = vld [vmem:[%s2734_s2 + $0x288] sm:$0xff] }
0x116c   :  { %1952 = vmatmul.msk.f32.vlgmr.msrb.gmra.mxu2 %vm247_vm1, %v1425_v18 }
0x116d   :  { %v1418_v7 = vsel %vm1417_vm3, %v2100_v5, %v1414_v19  ;;  %v1616_v19 = vld [vmem:[%s2734_s2 + $0x280] sm:$0xff] }
0x116e   :  { %v1420_v20 = vmul.f32 %v1418_v7, %v1386_v38 }
0x1170   :  { %v1423_v21 = vmul.f32 %v2015_v10, %v1420_v20 }
0x1172   :  { %v1426_v22 = vadd.f32 %v2016_v15, %v1423_v21  ;;  %v1619_v15 = vld [vmem:[%s2734_s2 + $0x298] sm:$0xff] }
0x1174   :  { %1953 = vmatmul.msk.f32.gmra.mxu2 %vm247_vm1, %v1426_v22 }
0x11ef   :  { %v1456_v27 = vpop.f32.mrf.mxu2 }
0x11f0   :  { %v1457_v29 = vadd.f32 %v2017_v25, %v1456_v27 }
0x11f2   :  { %v1954_v30 = vmul.f32 -1.442695, %v1457_v29 }
0x11f4   :  { %2101 = vpow2.f32 %v1954_v30 }
0x11f7   :  { %v1459_v31 = vpop.f32.mrf.mxu2 }
0x11f8   :  { %v1460_v32 = vadd.f32 %v2017_v25, %v1459_v31 }
0x11fa   :  { %v2102_v35 = vpop.eup %2101  ;;  %v1955_v36 = vmul.f32 -1.442695, %v1460_v32 }
0x11fb   :  { %v1468_v37 = vadd.f32 1.0, %v2102_v35 }
0x11fc   :  { %2103 = vpow2.f32 %v1955_v36 }
0x11fd   :  { %2105 = vrcp.f32 %v1468_v37  ;;  %v1481_v45 = vand.u32 2147483648, %v1468_v37  ;;  %v1479_v12 = vand.u32 2147483647, %v1468_v37  ;;  %vm1475_vm5 = vweird.f32 %v1468_v37 }
0x11ff   :  { %v1482_v49 = vor.u32 1.1754944e-38, %v1481_v45  ;;  %vm1480_vm8 = vcmp.eq.f32.partialorder %v1479_v12, 8.507059e+37 }
0x1202   :  { %v2104_v40 = vpop.eup %2103 }
0x1203   :  { %v2106_v41 = vpop.eup %2105  ;;  %v1469_v8 = vadd.f32 1.0, %v2104_v40 }
0x1204   :  { %v1471_v43 = vmul.f32 %v2106_v41, %v1468_v37  ;;  %vm1476_vm4 = vweird.f32 %v2106_v41 }
0x1205   :  { %2107 = vrcp.f32 %v1469_v8  ;;  %vm1477_vm7 = vmor %vm1475_vm5, %vm1476_vm4  ;;  %v1496_v54 = vand.u32 2147483648, %v1469_v8  ;;  %v1494_v56 = vand.u32 2147483647, %v1469_v8  ;;  %vm1490_vm11 = vweird.f32 %v1469_v8 }
0x1206   :  { %v1472_v44 = vsub.f32 1.0, %v1471_v43 }
0x1207   :  { %v1497_v58 = vor.u32 1.1754944e-38, %v1496_v54  ;;  %vm1495_vm13 = vcmp.eq.f32.partialorder %v1494_v56, 8.507059e+37 }
0x1208   :  { %v1473_v34 = vmul.f32 %v2106_v41, %v1472_v44 }
0x120a   :  { %v1474_v47 = vadd.f32 %v2106_v41, %v1473_v34 }
0x120b   :  { %v2108_v48 = vpop.eup %2107 }
0x120c   :  { %v1478_v38 = vsel %vm1477_vm7, %v2106_v41, %v1474_v47  ;;  %v1486_v50 = vmul.f32 %v2108_v48, %v1469_v8  ;;  %vm1491_vm9 = vweird.f32 %v2108_v48 }
0x120d   :  { %v1483_v51 = vsel %vm1480_vm8, %v1482_v49, %v1478_v38  ;;  %vm1492_vm12 = vmor %vm1490_vm11, %vm1491_vm9 }
0x120e   :  { %v1500_v52 = vmul.f32 %v1483_v51, %v1457_v29  ;;  %v1487_v53 = vsub.f32 1.0, %v1486_v50  ;;  %v2020_v51 = vld [vmem:[%s2734_s2 + $0x2c0] ss:$0 sm:$0xff] }
0x1210   :  { %v1488_v55 = vmul.f32 %v2108_v48, %v1487_v53  ;;  %1956 = vmatmul.msk.f32.vlgmr.msrb.gmra.mxu1 %vm247_vm1, %v1500_v52 }
0x1212   :  { %v1489_v57 = vadd.f32 %v2108_v48, %v1488_v55 }
0x1214   :  { %v1493_v59 = vsel %vm1492_vm12, %v2108_v48, %v1489_v57 }
0x1215   :  { %v1498_v61 = vsel %vm1495_vm13, %v1497_v58, %v1493_v59 }
0x1216   :  { %v1501_v62 = vmul.f32 %v1498_v61, %v1460_v32 }
0x1218   :  { %1957 = vmatmul.msk.f32.gmra.mxu1 %vm247_vm1, %v1501_v62 }
0x128d   :  { %v1529_v4 = vpop.f32.mrf.mxu1 }
0x128e   :  { %v1535_v5 = vadd.f32 %v1529_v4, %v2531_v39  ;;  %v1621_v39 = vld [vmem:[%s2734_s2 + $0x2a8] sm:$0xff] }
0x128f   :  { %1643 = vmatpush.msrb.mxu0 %v1621_v39 }
0x1290   :  { %v1539_v6 = vadd.f32 %v2018_v3, %v1535_v5 }
0x1292   :  { %1958 = vmatmul.msk.f32.vlgmr.msrb.gmra.mxu3 %vm247_vm1, %v1539_v6 }
0x1295   :  { %v1532_v9 = vpop.f32.mrf.mxu1 }
0x1296   :  { %v1536_v10 = vadd.f32 %v1532_v9, %v2536_v42  ;;  %v1620_v42 = vld [vmem:[%s2734_s2 + $0x2a0] sm:$0xff] }
0x1297   :  { %1644 = vmatpush.msrb.mxu0 %v1620_v42 }
0x1298   :  { %v1540_v11 = vadd.f32 %v2018_v3, %v1536_v10 }
0x1299   :  { %1645 = vmatpush.msrb.mxu0 %v1619_v15 }
0x129a   :  { %1959 = vmatmul.msk.f32.gmra.mxu3 %vm247_vm1, %v1540_v11 }
0x129b   :  { %1646 = vmatpush.msrb.mxu0 %v1618_v0 }
0x129d   :  { %1647 = vmatpush.msrb.mxu0 %v1617_v17 }
0x129f   :  { %1648 = vmatpush.msrb.mxu0 %v1616_v19 }
0x1315   :  { %v1570_v18 = vpop.f32.mrf.mxu3 }
0x1316   :  { %v1571_v7 = vadd.f32 %v2019_v16, %v1570_v18 }
0x1318   :  { %v1960_v20 = vmul.f32 -1.442695, %v1571_v7 }
0x131a   :  { %2109 = vpow2.f32 %v1960_v20 }
0x131d   :  { %v1573_v21 = vpop.f32.mrf.mxu3 }
0x131e   :  { %v1574_v22 = vadd.f32 %v2019_v16, %v1573_v21 }
0x1320   :  { %v2110_v23 = vpop.eup %2109  ;;  %v1961_v24 = vmul.f32 -1.442695, %v1574_v22 }
0x1321   :  { %v1582_v25 = vadd.f32 1.0, %v2110_v23 }
0x1322   :  { %2111 = vpow2.f32 %v1961_v24 }
0x1323   :  { %2113 = vrcp.f32 %v1582_v25  ;;  %v1595_v31 = vand.u32 2147483648, %v1582_v25  ;;  %v1593_v33 = vand.u32 2147483647, %v1582_v25  ;;  %vm1589_vm10 = vweird.f32 %v1582_v25 }
0x1325   :  { %v1596_v37 = vor.u32 1.1754944e-38, %v1595_v31  ;;  %vm1594_vm15 = vcmp.eq.f32.partialorder %v1593_v33, 8.507059e+37  ;;  %v1734_v33 = vld [vmem:[%s2734_s2 + $0x2d8] sm:$0xff] }
0x1328   :  { %v2112_v26 = vpop.eup %2111 }
0x1329   :  { %v2114_v27 = vpop.eup %2113  ;;  %v1583_v28 = vadd.f32 1.0, %v2112_v26 }
0x132a   :  { %v1585_v29 = vmul.f32 %v2114_v27, %v1582_v25  ;;  %vm1590_vm14 = vweird.f32 %v2114_v27 }
0x132b   :  { %2115 = vrcp.f32 %v1583_v28  ;;  %vm1591_vm6 = vmor %vm1589_vm10, %vm1590_vm14  ;;  %v1610_v45 = vand.u32 2147483648, %v1583_v28  ;;  %v1608_v12 = vand.u32 2147483647, %v1583_v28  ;;  %vm1604_vm3 = vweird.f32 %v1583_v28 }
0x132c   :  { %v1586_v30 = vsub.f32 1.0, %v1585_v29 }
0x132d   :  { %v1611_v48 = vor.u32 1.1754944e-38, %v1610_v45  ;;  %vm1609_vm5 = vcmp.eq.f32.partialorder %v1608_v12, 8.507059e+37  ;;  %v1735_v12 = vld [vmem:[%s2734_s2 + $0x2e0] sm:$0xff] }
0x132e   :  { %v1587_v32 = vmul.f32 %v2114_v27, %v1586_v30 }
0x1330   :  { %v1588_v35 = vadd.f32 %v2114_v27, %v1587_v32 }
0x1331   :  { %v2116_v36 = vpop.eup %2115 }
0x1332   :  { %v1592_v40 = vsel %vm1591_vm6, %v2114_v27, %v1588_v35  ;;  %v1600_v41 = vmul.f32 %v2116_v36, %v1583_v28  ;;  %vm1605_vm2 = vweird.f32 %v2116_v36 }
0x1333   :  { %v1597_v8 = vsel %vm1594_vm15, %v1596_v37, %v1592_v40  ;;  %vm1606_vm4 = vmor %vm1604_vm3, %vm1605_vm2 }
0x1334   :  { %v1614_v43 = vmul.f32 %v1597_v8, %v1571_v7  ;;  %v1601_v44 = vsub.f32 1.0, %v1600_v41  ;;  %v1842_v41 = vld [vmem:[%s2733_s1] sm:$0xff] }
0x1336   :  { %v1602_v34 = vmul.f32 %v2116_v36, %v1601_v44  ;;  %1962 = vmatmul.msk.f32.vlgmr.msrb.gmra.mxu0 %vm1626_vm0, %v1614_v43 }
0x1338   :  { %v1603_v47 = vadd.f32 %v2116_v36, %v1602_v34 }
0x133a   :  { %v1607_v49 = vsel %vm1606_vm4, %v2116_v36, %v1603_v47 }
0x133b   :  { %v1612_v38 = vsel %vm1609_vm5, %v1611_v48, %v1607_v49 }
0x133c   :  { %v1615_v50 = vmul.f32 %v1612_v38, %v1574_v22 }
0x133e   :  { %1963 = vmatmul.msk.f32.gmra.mxu0 %vm1626_vm0, %v1615_v50 }
0x13b3   :  { %v1650_v52 = vpop.f32.mrf.mxu0 }
0x13b4   :  { %v1651_v53 = vadd.f32 %v2020_v51, %v1650_v52 }
0x13b6   :  { %1738 = vrot.lane.b32.xlu2 %v1651_v53, %s2158_s25  ;;  %v1658_v61 = vsel %vm247_vm1, %v1651_v53, 0.0 }
0x13bb   :  { %v1653_v54 = vpop.f32.mrf.mxu0 }
0x13bc   :  { %v2637_v55 = vadd.f32 %v2020_v51, %v1653_v54 }
0x13be   :  { %1740 = vrot.lane.b32.xlu0 %v2637_v55, %s2158_s25  ;;  %v1661_v29 = vsel %vm247_vm1, %v2637_v55, 0.0 }
0x1410   :  { %v1739_v56 = vpop.permute.xlu2 %1738 }
0x1411   :  { %v1744_v57 = vsel %vm247_vm1, %v1739_v56, 0.0 }
0x1412   :  { %1745 = vadd.xlane.f32.xlu1 %v1744_v57 }
0x1430   :  { %v1741_v58 = vpop.permute.xlu0 %1740 }
0x1431   :  { %v1747_v59 = vsel %vm247_vm1, %v1741_v58, 0.0 }
0x1432   :  { %1748 = vadd.xlane.f32.xlu1 %v1747_v59 }
0x143a   :  { %1659 = vadd.xlane.f32.xlu1 %v1658_v61 }
0x1453   :  { %1825 = vrot.lane.b32.xlu1 %v1734_v33, %s2164_s13 }
0x1485   :  { %v1746_v62 = vpop.xlane.xlu1 %1745 }
0x1486   :  { %v1750_v63 = vmul.f32 %v1746_v62, %v2248_v46 }
0x1488   :  { %v1752_v1 = vrot.slane %v1750_v63, 4 }
0x148a   :  { %v1753_v2 = vadd.f32 %v1752_v1, %v1750_v63  ;;  %v1843_v63 = vld [vmem:[%s2733_s1 + $0x8] sm:$0xff] }
0x148c   :  { %v1754_v3 = vrot.slane %v1753_v2, 2 }
0x148e   :  { %v1755_v4 = vadd.f32 %v1754_v3, %v1753_v2 }
0x1490   :  { %v1756_v5 = vrot.slane %v1755_v4, 1 }
0x1492   :  { %v1757_v6 = vadd.f32 %v1756_v5, %v1755_v4  ;;  %v2688_v5 = vld [vmem:[%s2734_s2 + $0x2c8] sm:$0xff] }
0x1494   :  { %v1764_v9 = vmul.f32 %v1757_v6, %v2252_v60 }
0x1496   :  { %v2646_v10 = vsub.f32 %v1651_v53, %v1764_v9 }
0x1498   :  { %v1768_v11 = vmul.f32 %v2646_v10, %v2646_v10 }
0x149a   :  { %1772 = vrot.lane.b32.xlu2 %v1768_v11, %s2158_s25 }
0x14a5   :  { %v1749_v13 = vpop.xlane.xlu1 %1748 }
0x14a6   :  { %v1751_v14 = vmul.f32 %v1749_v13, %v2248_v46  ;;  %v2694_v13 = vld [vmem:[%s2734_s2 + $0x2d0] sm:$0xff]  ;;  %s2165_s2 = smov [#allocation2]  }
0x14a8   :  { %v1758_v39 = vrot.slane %v1751_v14, 4 }
0x14aa   :  { %v1759_v42 = vadd.f32 %v1758_v39, %v1751_v14 }
0x14ac   :  { %v1760_v15 = vrot.slane %v1759_v42, 2 }
0x14ad   :  { %v1660_v0 = vpop.xlane.xlu1 %1659 }
0x14ae   :  { %v1761_v16 = vadd.f32 %v1760_v15, %v1759_v42  ;;  %v1664_v17 = vmul.f32 %v1660_v0, %v2248_v46 }
0x14b0   :  { %v1762_v18 = vrot.slane %v1761_v16, 1  ;;  %v1666_v19 = vrot.slane %v1664_v17, 4 }
0x14b2   :  { %v1763_v7 = vadd.f32 %v1762_v18, %v1761_v16  ;;  %v1667_v20 = vadd.f32 %v1666_v19, %v1664_v17 }
0x14b4   :  { %v1668_v21 = vrot.slane %v1667_v20, 2  ;;  %v1765_v22 = vmul.f32 %v1763_v7, %v2252_v60 }
0x14b6   :  { %v1669_v23 = vadd.f32 %v1668_v21, %v1667_v20  ;;  %v2655_v24 = vsub.f32 %v2637_v55, %v1765_v22 }
0x14b8   :  { %v1670_v25 = vrot.slane %v1669_v23, 1  ;;  %v1769_v26 = vmul.f32 %v2655_v24, %v2655_v24 }
0x14ba   :  { %v1671_v27 = vadd.f32 %v1670_v25, %v1669_v23  ;;  %1774 = vrot.lane.b32.xlu0 %v1769_v26, %s2158_s25 }
0x14bc   :  { %v1678_v28 = vmul.f32 %v1671_v27, %v2252_v60 }
0x14be   :  { %v1680_v30 = vsub.f32 %v1651_v53, %v1678_v28 }
0x14c0   :  { %v1682_v31 = vmul.f32 %v1680_v30, %v1680_v30 }
0x14c2   :  { %v1684_v32 = vsel %vm247_vm1, %v1682_v31, 0.0 }
0x14c3   :  { %1662 = vadd.xlane.f32.xlu2 %v1661_v29 }
0x14c5   :  { %v1826_v25 = vpop.permute.xlu1 %1825 }
0x14cb   :  { %1685 = vadd.xlane.f32.xlu2 %v1684_v32 }
0x14e3   :  { %1848 = vrot.lane.b32.xlu2 %v1843_v63, %s2164_s13 }
0x14f4   :  { %v1773_v35 = vpop.permute.xlu2 %1772 }
0x14f5   :  { %v1778_v36 = vsel %vm247_vm1, %v1773_v35, 0.0 }
0x14f6   :  { %1779 = vadd.xlane.f32.xlu0 %v1778_v36 }
0x150a   :  { %1846 = vrot.lane.b32.xlu0 %v1842_v41, %s2164_s13 }
0x152c   :  { %v1775_v37 = vpop.permute.xlu0 %1774 }
0x152d   :  { %v1781_v40 = vsel %vm247_vm1, %v1775_v37, 0.0 }
0x152e   :  { %1782 = vadd.xlane.f32.xlu1 %v1781_v40 }
0x1536   :  { %v1663_v8 = vpop.xlane.xlu2 %1662 }
0x1537   :  { %v1665_v49 = vmul.f32 %v1663_v8, %v2248_v46 }
0x1539   :  { %v1672_v51 = vrot.slane %v1665_v49, 4 }
0x153b   :  { %v1673_v54 = vadd.f32 %v1672_v51, %v1665_v49 }
0x153d   :  { %v1674_v56 = vrot.slane %v1673_v54, 2 }
0x153e   :  { %v1686_v43 = vpop.xlane.xlu2 %1685 }
0x153f   :  { %v1690_v44 = vmul.f32 %v1686_v43, %v2248_v46  ;;  %v1675_v58 = vadd.f32 %v1674_v56, %v1673_v54 }
0x1541   :  { %v1692_v45 = vrot.slane %v1690_v44, 4  ;;  %v1676_v62 = vrot.slane %v1675_v58, 1 }
0x1543   :  { %v1693_v34 = vadd.f32 %v1692_v45, %v1690_v44  ;;  %v1677_v3 = vadd.f32 %v1676_v62, %v1675_v58 }
0x1545   :  { %v1694_v47 = vrot.slane %v1693_v34, 2  ;;  %v1679_v11 = vmul.f32 %v1677_v3, %v2252_v60 }
0x1546   :  { %v1849_v3 = vpop.permute.xlu2 %1848 }
0x1547   :  { %v1695_v48 = vadd.f32 %v1694_v47, %v1693_v34  ;;  %1831 = vrot.lane.b32.xlu1 %v1735_v12, %s2164_s13  ;;  %v2701_v42 = vsub.f32 %v2637_v55, %v1679_v11 }
0x1549   :  { %v1696_v38 = vrot.slane %v1695_v48, 1  ;;  %v1683_v15 = vmul.f32 %v2701_v42, %v2701_v42 }
0x154b   :  { %v1697_v50 = vadd.f32 %v1696_v38, %v1695_v48  ;;  %v1687_v17 = vsel %vm247_vm1, %v1683_v15, 0.0 }
0x154d   :  { %v1704_v52 = vmul.f32 %v1697_v50, %v2252_v60 }
0x154f   :  { %v1706_v53 = vadd.f32 1e-05, %v1704_v52 }
0x1551   :  { %2117 = vrsqrt.f32 %v1706_v53  ;;  %vm1714_vm8 = vweird.f32 %v1706_v53 }
0x1557   :  { %v2118_v57 = vpop.eup %2117 }
0x1558   :  { %v1709_v59 = vmul.f32 %v2118_v57, %v1706_v53  ;;  %vm1715_vm7 = vweird.f32 %v2118_v57 }
0x1559   :  { %vm1716_vm9 = vmor %vm1714_vm8, %vm1715_vm7 }
0x155a   :  { %v1710_v61 = vmul.f32 %v2118_v57, %v1709_v59 }
0x155c   :  { %v1711_v1 = vmul.f32 0.5, %v1710_v61 }
0x155e   :  { %v1712_v2 = vsub.f32 1.5, %v1711_v1 }
0x1560   :  { %v1713_v4 = vmul.f32 %v2118_v57, %v1712_v2 }
0x1562   :  { %v1717_v6 = vsel %vm1716_vm9, %v2118_v57, %v1713_v4 }
0x1563   :  { %v1728_v9 = vmul.f32 %v1717_v6, %v1680_v30 }
0x1565   :  { %v1730_v14 = vmul.f32 %v1728_v9, %v2688_v5 }
0x1567   :  { %v2698_v39 = vadd.f32 %v1730_v14, %v2694_v13 }
0x1569   :  { %1867 = vst.msk [vmem:[#allocation2 + $0x10] sm:$0xff] %vm247_vm1, %v2698_v39  ;;  %v1780_v0 = vpop.xlane.xlu0 %1779 }
0x156a   :  { %v1784_v16 = vmul.f32 %v1780_v0, %v2248_v46 }
0x156c   :  { %v1786_v18 = vrot.slane %v1784_v16, 4 }
0x156e   :  { %v1787_v19 = vadd.f32 %v1786_v18, %v1784_v16 }
0x1570   :  { %v1788_v7 = vrot.slane %v1787_v19, 2 }
0x1571   :  { %1688 = vadd.xlane.f32.xlu1 %v1687_v17 }
0x1572   :  { %v1789_v20 = vadd.f32 %v1788_v7, %v1787_v19 }
0x1574   :  { %v1790_v21 = vrot.slane %v1789_v20, 1 }
0x1576   :  { %v1791_v22 = vadd.f32 %v1790_v21, %v1789_v20 }
0x1578   :  { %v1798_v55 = vmul.f32 %v1791_v22, %v2252_v60 }
0x157a   :  { %v1800_v23 = vadd.f32 1e-05, %v1798_v55 }
0x157c   :  { %2119 = vrsqrt.f32 %v1800_v23  ;;  %vm1808_vm12 = vweird.f32 %v1800_v23  ;;  %v1847_v57 = vpop.permute.xlu0 %1846 }
0x1582   :  { %v2120_v26 = vpop.eup %2119 }
0x1583   :  { %v1803_v27 = vmul.f32 %v2120_v26, %v1800_v23  ;;  %vm1809_vm11 = vweird.f32 %v2120_v26 }
0x1584   :  { %vm1810_vm13 = vmor %vm1808_vm12, %vm1809_vm11 }
0x1585   :  { %v1804_v28 = vmul.f32 %v2120_v26, %v1803_v27 }
0x1587   :  { %v1805_v32 = vmul.f32 0.5, %v1804_v28 }
0x1589   :  { %v1806_v36 = vsub.f32 1.5, %v1805_v32 }
0x158b   :  { %v1807_v41 = vmul.f32 %v2120_v26, %v1806_v36 }
0x158d   :  { %v1811_v44 = vsel %vm1810_vm13, %v2120_v26, %v1807_v41 }
0x158e   :  { %v1822_v34 = vmul.f32 %v1811_v44, %v2646_v10 }
0x1590   :  { %v1828_v12 = vmul.f32 %v1826_v25, %v1822_v34 }
0x15a1   :  { %v1783_v29 = vpop.xlane.xlu1 %1782 }
0x15a2   :  { %v1785_v30 = vmul.f32 %v1783_v29, %v2248_v46 }
0x15a4   :  { %v1792_v31 = vrot.slane %v1785_v30, 4 }
0x15a6   :  { %v1793_v33 = vadd.f32 %v1792_v31, %v1785_v30 }
0x15a8   :  { %v1794_v35 = vrot.slane %v1793_v33, 2 }
0x15aa   :  { %v1795_v37 = vadd.f32 %v1794_v35, %v1793_v33 }
0x15ac   :  { %v1796_v40 = vrot.slane %v1795_v37, 1 }
0x15ae   :  { %v1797_v8 = vadd.f32 %v1796_v40, %v1795_v37 }
0x15b0   :  { %v1799_v43 = vmul.f32 %v1797_v8, %v2252_v60 }
0x15b2   :  { %v1801_v45 = vadd.f32 1e-05, %v1799_v43 }
0x15b4   :  { %2121 = vrsqrt.f32 %v1801_v45  ;;  %vm1818_vm10 = vweird.f32 %v1801_v45 }
0x15b9   :  { %v1832_v47 = vpop.permute.xlu1 %1831 }
0x15ba   :  { %v2122_v48 = vpop.eup %2121  ;;  %v1834_v49 = vadd.f32 %v1832_v47, %v1828_v12 }
0x15bb   :  { %v1813_v38 = vmul.f32 %v2122_v48, %v1801_v45  ;;  %vm1819_vm14 = vweird.f32 %v2122_v48 }
0x15bc   :  { %v1836_v50 = vmul.f32 0.5, %v1834_v49  ;;  %1871 = vrot.lane.b32.xlu2 %v1834_v49, %s2158_s25  ;;  %vm1820_vm6 = vmor %vm1818_vm10, %vm1819_vm14 }
0x15bd   :  { %v1814_v51 = vmul.f32 %v2122_v48, %v1813_v38 }
0x15be   :  { %v1838_v52 = vmul.f32 1.442695, %v1836_v50 }
0x15bf   :  { %v1815_v53 = vmul.f32 0.5, %v1814_v51 }
0x15c0   :  { %2123 = vpow2.f32 %v1838_v52 }
0x15c1   :  { %v1816_v54 = vsub.f32 1.5, %v1815_v53 }
0x15c3   :  { %v1817_v56 = vmul.f32 %v2122_v48, %v1816_v54 }
0x15c5   :  { %v1821_v10 = vsel %vm1820_vm6, %v2122_v48, %v1817_v56 }
0x15c6   :  { %v2124_v58 = vpop.eup %2123  ;;  %v1823_v59 = vmul.f32 %v1821_v10, %v2655_v24 }
0x15c7   :  { %v1852_v61 = vmul.f32 %v2124_v58, %v1847_v57 }
0x15c8   :  { %v1829_v62 = vmul.f32 %v1826_v25, %v1823_v59 }
0x15c9   :  { %1856 = vrot.lane.b32.xlu0 %v1852_v61, %s2158_s25 }
0x15ca   :  { %v1835_v63 = vadd.f32 %v1832_v47, %v1829_v62 }
0x15cc   :  { %v1837_v1 = vmul.f32 0.5, %v1835_v63 }
0x15ce   :  { %v1840_v2 = vmul.f32 1.442695, %v1837_v1 }
0x15d0   :  { %2125 = vpow2.f32 %v1840_v2 }
0x15d6   :  { %v2126_v4 = vpop.eup %2125 }
0x15d7   :  { %v1853_v6 = vmul.f32 %v2126_v4, %v1849_v3 }
0x15d9   :  { %1858 = vrot.lane.b32.xlu0 %v1853_v6, %s2158_s25 }
0x15e1   :  { %1873 = vrot.lane.b32.xlu0 %v1835_v63, %s2158_s25  ;;  %s1884_s25 = sshll.u32 %s2165_s2, 4  ;;  %s1885_s25 = int_to_ptr.vmem [resolvable:$true] %s1884_s25 }
0x15e4   :  { %v1689_v9 = vpop.xlane.xlu1 %1688 }
0x15e5   :  { %v1691_v11 = vmul.f32 %v1689_v9, %v2248_v46 }
0x15e7   :  { %v1698_v14 = vrot.slane %v1691_v11, 4 }
0x15e9   :  { %v1699_v24 = vadd.f32 %v1698_v14, %v1691_v11 }
0x15eb   :  { %v1700_v15 = vrot.slane %v1699_v24, 2 }
0x15ed   :  { %v1701_v0 = vadd.f32 %v1700_v15, %v1699_v24 }
0x15ef   :  { %v1702_v16 = vrot.slane %v1701_v0, 1 }
0x15f1   :  { %v1703_v17 = vadd.f32 %v1702_v16, %v1701_v0 }
0x15f3   :  { %v1705_v18 = vmul.f32 %v1703_v17, %v2252_v60 }
0x15f5   :  { %v1707_v19 = vadd.f32 1e-05, %v1705_v18 }
0x15f7   :  { %2127 = vrsqrt.f32 %v1707_v19  ;;  %vm1724_vm0 = vweird.f32 %v1707_v19 }
0x15fd   :  { %v2128_v7 = vpop.eup %2127 }
0x15fe   :  { %v1719_v20 = vmul.f32 %v2128_v7, %v1707_v19  ;;  %vm1725_vm15 = vweird.f32 %v2128_v7 }
0x15ff   :  { %vm1726_vm2 = vmor %vm1724_vm0, %vm1725_vm15 }
0x1600   :  { %v1720_v21 = vmul.f32 %v2128_v7, %v1719_v20 }
0x1602   :  { %v1721_v22 = vmul.f32 0.5, %v1720_v21 }
0x1604   :  { %v1722_v55 = vsub.f32 1.5, %v1721_v22 }
0x1606   :  { %v1723_v23 = vmul.f32 %v2128_v7, %v1722_v55 }
0x1608   :  { %v1727_v46 = vsel %vm1726_vm2, %v2128_v7, %v1723_v23 }
0x1609   :  { %v1729_v25 = vmul.f32 %v1727_v46, %v2701_v42 }
0x160b   :  { %v1731_v26 = vmul.f32 %v1729_v25, %v2688_v5 }
0x160d   :  { %v1733_v27 = vadd.f32 %v1731_v26, %v2694_v13 }
0x160f   :  { %1868 = vst.msk [vmem:[#allocation2 + $0x18] sm:$0xff] %vm247_vm1, %v1733_v27 }
0x1616   :  { %v1872_v60 = vpop.permute.xlu2 %1871 }
0x1617   :  { %1878 = vst.msk [vmem:[#allocation2 + $0x20] sm:$0xff] %vm247_vm1, %v1872_v60 }
0x163b   :  { %v1857_v28 = vpop.permute.xlu0 %1856 }
0x163c   :  { %v1862_v29 = vadd.f32 %v1857_v28, %v2698_v39 }
0x163e   :  { %1864 = vst.msk [vmem:[#allocation2] sm:$0xff] %vm247_vm1, %v1862_v29 }
0x164b   :  { %v1859_v30 = vpop.permute.xlu0 %1858 }
0x164c   :  { %v1863_v31 = vadd.f32 %v1859_v30, %v1733_v27 }
0x164e   :  { %1865 = vst.msk [vmem:[#allocation2 + $0x8] sm:$0xff] %vm247_vm1, %v1863_v31 }
0x1653   :  { %v1874_v5 = vpop.permute.xlu0 %1873 }
0x1654   :  { %1879 = vst.msk [vmem:[#allocation2 + $0x28] sm:$0xff] %vm247_vm1, %v1874_v5 }
0x1655   :  { %1892 = dma.vmem_to_hbm [thread:$0]  %s1885_s25, 768, %s1887_s24, [#allocation3], %s2166_s30, %s2166_s30, %s2167_s4  }
0x1656   :  { %2153 = dma.done.wait [#allocation3], 768  }
0x1657   :  { %2154 = vsyncadd [#allocation3], 4294966528 }
0x1658   :  { %1897 = vsyncpa [#allocation3], 1 }

</bundles_post_ra>
